<compile_context>
chip_gen: v6e
topology: v6e:2x2x1
jax: 0.10.0
libtpu: 0.0.40
codegen_flags: <defaults>
</compile_context>

<pallas_src>
import functools

import jax
import jax.numpy as jnp
from jax import lax
from jax.experimental import pallas as pl
from jax.experimental.pallas import tpu as pltpu


_MXU_DTYPE = jnp.bfloat16                      # MXU operand dtype (f32 accumulation)
_NN = (((1,), (0,)), ((), ()))                 # x @ w          (contract K)
_NT = (((1,), (1,)), ((), ()))                 # q @ k^T        (contract last dims)


def _mxu(a, b, dims):
    """MXU matmul: bf16 operands, f32 accumulation, no explicit transpose."""
    return lax.dot_general(a.astype(_MXU_DTYPE), b.astype(_MXU_DTYPE), dims,
                           preferred_element_type=jnp.float32)


def _layer_norm(x, w, b, eps):
    mu = jnp.mean(x, axis=-1, keepdims=True)
    var = jnp.mean(jnp.square(x - mu), axis=-1, keepdims=True)
    return (x - mu) * lax.rsqrt(var + eps) * w + b


def _mha(q_in, k_in, v_in, w_ref, b_ref, nhead):
    """Multi-head attention for one batch element, all heads unrolled in-kernel.

    q_in: (Tq, C); k_in, v_in: (Tk, C).
    w_ref: (4, C, C) = [Wq, Wk, Wv, Wo];  b_ref: (4, C) = [bq, bk, bv, bo].
    Returns (Tq, C) in f32.
    """
    C = q_in.shape[-1]
    dh = C // nhead
    scale = float(dh) ** -0.5

    b_all = b_ref[...].astype(jnp.float32)                    # (4, C)
    q = _mxu(q_in, w_ref[0], _NN) + b_all[0:1]                # (Tq, C)
    k = _mxu(k_in, w_ref[1], _NN) + b_all[1:2]                # (Tk, C)
    v = _mxu(v_in, w_ref[2], _NN) + b_all[2:3]                # (Tk, C)
    wo = w_ref[3]                                             # (C, C)

    acc = None
    for h in range(nhead):                                    # static unroll
        lo = h * dh
        qh = q[:, lo:lo + dh]                                 # (Tq, dh)
        kh = k[:, lo:lo + dh]                                 # (Tk, dh)
        vh = v[:, lo:lo + dh]                                 # (Tk, dh)
        s = _mxu(qh, kh, _NT) * scale                         # (Tq, Tk)
        s = s - jnp.max(s, axis=-1, keepdims=True)
        p = jnp.exp(s)
        p = p * pl.reciprocal(jnp.sum(p, axis=-1, keepdims=True), approx=True)
        oh = _mxu(p, vh, _NN)                                 # (Tq, dh)
        # head merge + output projection fused: concat(heads) @ Wo == sum_h oh @ Wo[rows_h]
        contrib = _mxu(oh, wo[lo:lo + dh, :], _NN)            # (Tq, C)
        acc = contrib if acc is None else acc + contrib
    return acc + b_all[3:4]


def _decoder_kernel(tgt0_ref, qpos_ref, mem_ref, memk_ref,
                    sa_w_ref, sa_b_ref, ca_w_ref, ca_b_ref,
                    ln_w_ref, ln_b_ref,
                    ffn_w1_ref, ffn_b1_ref, ffn_w2_ref, ffn_b2_ref,
                    fn_w_ref, fn_b_ref,
                    out_ref, tgt_scr, *, nhead, eps):
    layer = pl.program_id(1)

    @pl.when(layer == 0)
    def _():
        tgt_scr[...] = tgt0_ref[...].astype(jnp.float32)

    tgt = tgt_scr[...]                                        # (T, C) f32, resident
    qpos = qpos_ref[...].astype(jnp.float32)

    ln_w = ln_w_ref[...].astype(jnp.float32)                  # (3, C)
    ln_b = ln_b_ref[...].astype(jnp.float32)

    # --- self attention (post-norm) ---
    q_sa = tgt + qpos
    tgt2 = _mha(q_sa, q_sa, tgt, sa_w_ref, sa_b_ref, nhead)
    tgt = _layer_norm(tgt + tgt2, ln_w[0:1], ln_b[0:1], eps)

    # --- cross attention over memory ---
    mem = mem_ref[...].astype(jnp.float32)                    # (S, C)
    memk = memk_ref[...].astype(jnp.float32)                  # memory + pos
    tgt2 = _mha(tgt + qpos, memk, mem, ca_w_ref, ca_b_ref, nhead)
    tgt = _layer_norm(tgt + tgt2, ln_w[1:2], ln_b[1:2], eps)

    # --- feed-forward ---
    hid = _mxu(tgt, ffn_w1_ref[...], _NN) + ffn_b1_ref[...].astype(jnp.float32)
    hid = jnp.maximum(hid, 0.0)
    tgt2 = _mxu(hid, ffn_w2_ref[...], _NN) + ffn_b2_ref[...].astype(jnp.float32)
    tgt = _layer_norm(tgt + tgt2, ln_w[2:3], ln_b[2:3], eps)

    tgt_scr[...] = tgt                                        # carry to next layer
    # final / intermediate LayerNorm fused here (no zeros residual, no extra launch)
    out_ref[...] = _layer_norm(
        tgt, fn_w_ref[...].astype(jnp.float32),
        fn_b_ref[...].astype(jnp.float32), eps).astype(out_ref.dtype)


def transformer_decoder_forward(tgt, memory, height, width, pos, query_pos,
                                params, nhead, return_intermediate):
    """Matches TransformerDecoder.forward (masks assumed None, eval mode)."""
    del height, width  # TODO(synk): shunted KV spatial reduction not implemented
    T, B, C = tgt.shape
    S = memory.shape[0]
    L = params["sa_w"].shape[0]
    F = params["ffn_w1"].shape[-1]
    assert C % nhead == 0

    # Batch-major layout for the kernel (batch is the "parallel" grid axis).
    tgt_b = jnp.transpose(tgt, (1, 0, 2))                     # (B, T, C)
    qpos_b = jnp.transpose(query_pos, (1, 0, 2))              # (B, T, C)
    mem_b = jnp.transpose(memory, (1, 0, 2))                  # (B, S, C)
    memk_b = mem_b + jnp.transpose(pos, (1, 0, 2))            # memory + pos, once

    per_batch = lambda b, l: (b, 0, 0)
    per_layer3 = lambda b, l: (l, 0, 0)
    per_layer4 = lambda b, l: (l, 0, 0, 0)
    fixed2 = lambda b, l: (0, 0)

    out = pl.pallas_call(
        functools.partial(_decoder_kernel, nhead=nhead, eps=1e-5),
        grid=(B, L),
        in_specs=[
            pl.BlockSpec((None, T, C), per_batch),            # tgt
            pl.BlockSpec((None, T, C), per_batch),            # query_pos
            pl.BlockSpec((None, S, C), per_batch),            # memory
            pl.BlockSpec((None, S, C), per_batch),            # memory + pos
            pl.BlockSpec((None, 4, C, C), per_layer4),        # self-attn Wq/Wk/Wv/Wo
            pl.BlockSpec((None, 4, C), per_layer3),           # self-attn biases
            pl.BlockSpec((None, 4, C, C), per_layer4),        # cross-attn weights
            pl.BlockSpec((None, 4, C), per_layer3),           # cross-attn biases
            pl.BlockSpec((None, 3, C), per_layer3),           # norm1/2/3 weight
            pl.BlockSpec((None, 3, C), per_layer3),           # norm1/2/3 bias
            pl.BlockSpec((None, C, F), per_layer3),           # ffn w1
            pl.BlockSpec((None, 1, F), per_layer3),           # ffn b1
            pl.BlockSpec((None, F, C), per_layer3),           # ffn w2
            pl.BlockSpec((None, 1, C), per_layer3),           # ffn b2
            pl.BlockSpec((1, C), fixed2),                     # final norm weight
            pl.BlockSpec((1, C), fixed2),                     # final norm bias
        ],
        out_specs=pl.BlockSpec((None, None, T, C), lambda b, l: (l, b, 0, 0)),
        out_shape=jax.ShapeDtypeStruct((L, B, T, C), tgt.dtype),
        scratch_shapes=[pltpu.VMEM((T, C), jnp.float32)],
        compiler_params=pltpu.CompilerParams(
            dimension_semantics=("parallel", "arbitrary"),
            vmem_limit_bytes=32 * 1024 * 1024),
    )(tgt_b, qpos_b, mem_b, memk_b,
      params["sa_w"], params["sa_b"], params["ca_w"], params["ca_b"],
      params["ln_w"], params["ln_b"],
      params["ffn_w1"], params["ffn_b1"], params["ffn_w2"], params["ffn_b2"],
      params["fn_w"], params["fn_b"])

    out = jnp.transpose(out, (0, 2, 1, 3))                    # (L, T, B, C)
    if return_intermediate:
        return out                                            # stack of norm(output_l)
    return out[-1:]                                           # norm(final).unsqueeze(0)


# ----------------------------------------------------------------------------
# Deterministic parameter initialization (stacked per-layer slabs)
# ----------------------------------------------------------------------------
def init_params(key, num_layers, d_model, dff):
    keys = jax.random.split(key, 4)

    def w(k, shape):
        return jax.random.normal(k, shape, jnp.float32) * 0.02

    return {
        "sa_w": w(keys[0], (num_layers, 4, d_model, d_model)),   # Wq, Wk, Wv, Wo
        "sa_b": jnp.zeros((num_layers, 4, d_model), jnp.float32),
        "ca_w": w(keys[1], (num_layers, 4, d_model, d_model)),
        "ca_b": jnp.zeros((num_layers, 4, d_model), jnp.float32),
        "ln_w": jnp.ones((num_layers, 3, d_model), jnp.float32),  # norm1/2/3
        "ln_b": jnp.zeros((num_layers, 3, d_model), jnp.float32),
        "ffn_w1": w(keys[2], (num_layers, d_model, dff)),
        "ffn_b1": jnp.zeros((num_layers, 1, dff), jnp.float32),
        "ffn_w2": w(keys[3], (num_layers, dff, d_model)),
        "ffn_b2": jnp.zeros((num_layers, 1, d_model), jnp.float32),
        "fn_w": jnp.ones((1, d_model), jnp.float32),              # final norm
        "fn_b": jnp.zeros((1, d_model), jnp.float32),
    }


# ----------------------------------------------------------------------------
if __name__ == "__main__":
    key = jax.random.PRNGKey(0)
    B, T, C, nhead, dff = 2, 8, 32, 4, 64
    height, width = 4, 4
    S = height * width
    num_layers = 2
    return_intermediate = True

    k1, k2, k3, k4, kp = jax.random.split(key, 5)
    tgt = jax.random.normal(k1, (T, B, C), jnp.float32)        # queries
    memory = jax.random.normal(k2, (S, B, C), jnp.float32)     # flattened features
    pos = jax.random.normal(k3, (S, B, C), jnp.float32)
    query_pos = jax.random.normal(k4, (T, B, C), jnp.float32)

    params = init_params(kp, num_layers, C, dff)

    out = transformer_decoder_forward(tgt, memory, height, width, pos, query_pos,
                                      params, nhead, return_intermediate)
    out = jax.block_until_ready(out)

    expected_shape = (num_layers, T, B, C) if return_intermediate else (1, T, B, C)
    assert out.shape == expected_shape, out.shape
    assert bool(jnp.all(jnp.isfinite(out)))
    print("KERNEL_OK")
</pallas_src>

<mosaic_0001>
module attributes {stable_mosaic.version = 11 : i64} {
  func.func @_decoder_kernel(%arg0: i32, %arg1: i32, %arg2: memref<1x8x32xf32, #tpu.memory_space<vmem>>, %arg3: memref<1x8x32xf32, #tpu.memory_space<vmem>>, %arg4: memref<1x16x32xf32, #tpu.memory_space<vmem>>, %arg5: memref<1x16x32xf32, #tpu.memory_space<vmem>>, %arg6: memref<1x4x32x32xf32, #tpu.memory_space<vmem>>, %arg7: memref<1x4x32xf32, #tpu.memory_space<vmem>>, %arg8: memref<1x4x32x32xf32, #tpu.memory_space<vmem>>, %arg9: memref<1x4x32xf32, #tpu.memory_space<vmem>>, %arg10: memref<1x3x32xf32, #tpu.memory_space<vmem>>, %arg11: memref<1x3x32xf32, #tpu.memory_space<vmem>>, %arg12: memref<1x32x64xf32, #tpu.memory_space<vmem>>, %arg13: memref<1x1x64xf32, #tpu.memory_space<vmem>>, %arg14: memref<1x64x32xf32, #tpu.memory_space<vmem>>, %arg15: memref<1x1x32xf32, #tpu.memory_space<vmem>>, %arg16: memref<1x32xf32, #tpu.memory_space<vmem>>, %arg17: memref<1x32xf32, #tpu.memory_space<vmem>>, %arg18: memref<1x1x8x32xf32, #tpu.memory_space<vmem>>, %arg19: memref<8x32xf32, #tpu.memory_space<vmem>>) attributes {dimension_semantics = [#tpu.dimension_semantics<parallel>, #tpu.dimension_semantics<arbitrary>], iteration_bounds = array<i64: 2, 2>, scalar_prefetch = 0 : i64, scratch_operands = 1 : i64, tpu.core_type = #tpu.core_type<tc>, window_params = [{transform_indices = @transform_0, window_bounds = array<i64: 1, 8, 32>}, {transform_indices = @transform_1, window_bounds = array<i64: 1, 8, 32>}, {transform_indices = @transform_2, window_bounds = array<i64: 1, 16, 32>}, {transform_indices = @transform_3, window_bounds = array<i64: 1, 16, 32>}, {transform_indices = @transform_4, window_bounds = array<i64: 1, 4, 32, 32>}, {transform_indices = @transform_5, window_bounds = array<i64: 1, 4, 32>}, {transform_indices = @transform_6, window_bounds = array<i64: 1, 4, 32, 32>}, {transform_indices = @transform_7, window_bounds = array<i64: 1, 4, 32>}, {transform_indices = @transform_8, window_bounds = array<i64: 1, 3, 32>}, {transform_indices = @transform_9, window_bounds = array<i64: 1, 3, 32>}, {transform_indices = @transform_10, window_bounds = array<i64: 1, 32, 64>}, {transform_indices = @transform_11, window_bounds = array<i64: 1, 1, 64>}, {transform_indices = @transform_12, window_bounds = array<i64: 1, 64, 32>}, {transform_indices = @transform_13, window_bounds = array<i64: 1, 1, 32>}, {pipeline_mode = #tpu.pipeline_mode<synchronous>, transform_indices = @transform_14, window_bounds = array<i64: 1, 32>}, {pipeline_mode = #tpu.pipeline_mode<synchronous>, transform_indices = @transform_15, window_bounds = array<i64: 1, 32>}, {transform_indices = @transform_16, window_bounds = array<i64: 1, 1, 8, 32>}]} {
    %c0_i32 = arith.constant 0 : i32
    %0 = arith.cmpi eq, %arg1, %c0_i32 : i32
    %1 = arith.extui %0 : i1 to i32
    %c0_i32_0 = arith.constant 0 : i32
    %2 = arith.cmpi ne, %1, %c0_i32_0 : i32
    scf.if %2 {
      %c0_150 = arith.constant 0 : index
      %c0_151 = arith.constant 0 : index
      %c0_152 = arith.constant 0 : index
      %407 = vector.load %arg2[%c0_150, %c0_151, %c0_152] : memref<1x8x32xf32, #tpu.memory_space<vmem>>, vector<1x8x32xf32>
      %408 = vector.shape_cast %407 : vector<1x8x32xf32> to vector<8x32xf32>
      %c0_153 = arith.constant 0 : index
      %c0_154 = arith.constant 0 : index
      %409 = vector.load %arg19[%c0_153, %c0_154] : memref<8x32xf32, #tpu.memory_space<vmem>>, vector<8x32xf32>
      tpu.vector_store %arg19[%c0_153, %c0_154], %408 {strides = array<i32>} : memref<8x32xf32, #tpu.memory_space<vmem>>, vector<8x32xf32>,
    } else {
    }
    %c0 = arith.constant 0 : index
    %c0_1 = arith.constant 0 : index
    %3 = vector.load %arg19[%c0, %c0_1] : memref<8x32xf32, #tpu.memory_space<vmem>>, vector<8x32xf32>
    %c0_2 = arith.constant 0 : index
    %c0_3 = arith.constant 0 : index
    %c0_4 = arith.constant 0 : index
    %4 = vector.load %arg3[%c0_2, %c0_3, %c0_4] : memref<1x8x32xf32, #tpu.memory_space<vmem>>, vector<1x8x32xf32>
    %5 = vector.shape_cast %4 : vector<1x8x32xf32> to vector<8x32xf32>
    %c0_5 = arith.constant 0 : index
    %c0_6 = arith.constant 0 : index
    %c0_7 = arith.constant 0 : index
    %6 = vector.load %arg10[%c0_5, %c0_6, %c0_7] : memref<1x3x32xf32, #tpu.memory_space<vmem>>, vector<1x3x32xf32>
    %7 = vector.shape_cast %6 : vector<1x3x32xf32> to vector<3x32xf32>
    %c0_8 = arith.constant 0 : index
    %c0_9 = arith.constant 0 : index
    %c0_10 = arith.constant 0 : index
    %8 = vector.load %arg11[%c0_8, %c0_9, %c0_10] : memref<1x3x32xf32, #tpu.memory_space<vmem>>, vector<1x3x32xf32>
    %9 = vector.shape_cast %8 : vector<1x3x32xf32> to vector<3x32xf32>
    %10 = arith.addf %3, %5 : vector<8x32xf32>
    %c0_11 = arith.constant 0 : index
    %c0_12 = arith.constant 0 : index
    %c0_13 = arith.constant 0 : index
    %11 = vector.load %arg7[%c0_11, %c0_12, %c0_13] : memref<1x4x32xf32, #tpu.memory_space<vmem>>, vector<1x4x32xf32>
    %12 = vector.shape_cast %11 : vector<1x4x32xf32> to vector<4x32xf32>
    %c0_14 = arith.constant 0 : index
    %c0_15 = arith.constant 0 : index
    %c0_16 = arith.constant 0 : index
    %c0_17 = arith.constant 0 : index
    %13 = vector.load %arg6[%c0_14, %c0_15, %c0_16, %c0_17] : memref<1x4x32x32xf32, #tpu.memory_space<vmem>>, vector<1x1x32x32xf32>
    %14 = vector.shape_cast %13 : vector<1x1x32x32xf32> to vector<32x32xf32>
    %15 = arith.truncf %10 : vector<8x32xf32> to vector<8x32xbf16>
    %16 = arith.truncf %14 : vector<32x32xf32> to vector<32x32xbf16>
    %cst = arith.constant dense<0.000000e+00> : vector<8x32xf32>
    %17 = tpu.matmul %15, %16, %cst {dimension_numbers = #tpu.dot_dimension_numbers<[1], [0], [0], [1], [0, 0, 1, 1], [], []>} : vector<8x32xbf16>, vector<32x32xbf16>, vector<8x32xf32> -> vector<8x32xf32>
    %18 = vector.extract_strided_slice %12 {offsets = [0, 0], sizes = [1, 32], strides = [1, 1]} : vector<4x32xf32> to vector<1x32xf32>
    %19 = vector.broadcast %18 : vector<1x32xf32> to vector<8x32xf32>
    %20 = arith.addf %17, %19 : vector<8x32xf32>
    %c0_18 = arith.constant 0 : index
    %c1 = arith.constant 1 : index
    %c0_19 = arith.constant 0 : index
    %c0_20 = arith.constant 0 : index
    %21 = vector.load %arg6[%c0_18, %c1, %c0_19, %c0_20] : memref<1x4x32x32xf32, #tpu.memory_space<vmem>>, vector<1x1x32x32xf32>
    %22 = vector.shape_cast %21 : vector<1x1x32x32xf32> to vector<32x32xf32>
    %23 = arith.truncf %10 : vector<8x32xf32> to vector<8x32xbf16>
    %24 = arith.truncf %22 : vector<32x32xf32> to vector<32x32xbf16>
    %cst_21 = arith.constant dense<0.000000e+00> : vector<8x32xf32>
    %25 = tpu.matmul %23, %24, %cst_21 {dimension_numbers = #tpu.dot_dimension_numbers<[1], [0], [0], [1], [0, 0, 1, 1], [], []>} : vector<8x32xbf16>, vector<32x32xbf16>, vector<8x32xf32> -> vector<8x32xf32>
    %26 = vector.extract_strided_slice %12 {offsets = [1, 0], sizes = [1, 32], strides = [1, 1]} : vector<4x32xf32> to vector<1x32xf32>
    %27 = vector.broadcast %26 : vector<1x32xf32> to vector<8x32xf32>
    %28 = arith.addf %25, %27 : vector<8x32xf32>
    %c0_22 = arith.constant 0 : index
    %c2 = arith.constant 2 : index
    %c0_23 = arith.constant 0 : index
    %c0_24 = arith.constant 0 : index
    %29 = vector.load %arg6[%c0_22, %c2, %c0_23, %c0_24] : memref<1x4x32x32xf32, #tpu.memory_space<vmem>>, vector<1x1x32x32xf32>
    %30 = vector.shape_cast %29 : vector<1x1x32x32xf32> to vector<32x32xf32>
    %31 = arith.truncf %3 : vector<8x32xf32> to vector<8x32xbf16>
    %32 = arith.truncf %30 : vector<32x32xf32> to vector<32x32xbf16>
    %cst_25 = arith.constant dense<0.000000e+00> : vector<8x32xf32>
    %33 = tpu.matmul %31, %32, %cst_25 {dimension_numbers = #tpu.dot_dimension_numbers<[1], [0], [0], [1], [0, 0, 1, 1], [], []>} : vector<8x32xbf16>, vector<32x32xbf16>, vector<8x32xf32> -> vector<8x32xf32>
    %34 = vector.extract_strided_slice %12 {offsets = [2, 0], sizes = [1, 32], strides = [1, 1]} : vector<4x32xf32> to vector<1x32xf32>
    %35 = vector.broadcast %34 : vector<1x32xf32> to vector<8x32xf32>
    %36 = arith.addf %33, %35 : vector<8x32xf32>
    %c0_26 = arith.constant 0 : index
    %c3 = arith.constant 3 : index
    %c0_27 = arith.constant 0 : index
    %c0_28 = arith.constant 0 : index
    %37 = vector.load %arg6[%c0_26, %c3, %c0_27, %c0_28] : memref<1x4x32x32xf32, #tpu.memory_space<vmem>>, vector<1x1x32x32xf32>
    %38 = vector.shape_cast %37 : vector<1x1x32x32xf32> to vector<32x32xf32>
    %39 = vector.extract_strided_slice %20 {offsets = [0, 0], sizes = [8, 8], strides = [1, 1]} : vector<8x32xf32> to vector<8x8xf32>
    %40 = vector.extract_strided_slice %28 {offsets = [0, 0], sizes = [8, 8], strides = [1, 1]} : vector<8x32xf32> to vector<8x8xf32>
    %41 = vector.extract_strided_slice %36 {offsets = [0, 0], sizes = [8, 8], strides = [1, 1]} : vector<8x32xf32> to vector<8x8xf32>
    %42 = arith.truncf %39 : vector<8x8xf32> to vector<8x8xbf16>
    %43 = arith.truncf %40 : vector<8x8xf32> to vector<8x8xbf16>
    %cst_29 = arith.constant dense<0.000000e+00> : vector<8x8xf32>
    %44 = tpu.matmul %42, %43, %cst_29 {dimension_numbers = #tpu.dot_dimension_numbers<[1], [1], [0], [0], [0, 0, 1, 0], [], []>} : vector<8x8xbf16>, vector<8x8xbf16>, vector<8x8xf32> -> vector<8x8xf32>
    %cst_30 = arith.constant 0.353553385 : f32
    %45 = vector.broadcast %cst_30 : f32 to vector<8x8xf32>
    %46 = arith.mulf %44, %45 : vector<8x8xf32>
    %cst_31 = arith.constant dense<0xFF800000> : vector<8xf32>
    %47 = vector.multi_reduction <maximumf>, %46, %cst_31 [1] : vector<8x8xf32> to vector<8xf32>
    %48 = vector.shape_cast %47 : vector<8xf32> to vector<8x1xf32>
    %49 = vector.broadcast %48 : vector<8x1xf32> to vector<8x8xf32>
    %50 = arith.subf %46, %49 : vector<8x8xf32>
    %51 = math.exp %50 : vector<8x8xf32>
    %cst_32 = arith.constant dense<0.000000e+00> : vector<8xf32>
    %52 = vector.multi_reduction <add>, %51, %cst_32 [1] : vector<8x8xf32> to vector<8xf32>
    %53 = vector.shape_cast %52 : vector<8xf32> to vector<8x1xf32>
    %54 = tpu.reciprocal %53 {approx = true} : vector<8x1xf32> -> vector<8x1xf32>
    %55 = vector.broadcast %54 : vector<8x1xf32> to vector<8x8xf32>
    %56 = arith.mulf %51, %55 : vector<8x8xf32>
    %57 = arith.truncf %56 : vector<8x8xf32> to vector<8x8xbf16>
    %58 = arith.truncf %41 : vector<8x8xf32> to vector<8x8xbf16>
    %cst_33 = arith.constant dense<0.000000e+00> : vector<8x8xf32>
    %59 = tpu.matmul %57, %58, %cst_33 {dimension_numbers = #tpu.dot_dimension_numbers<[1], [0], [0], [1], [0, 0, 1, 1], [], []>} : vector<8x8xbf16>, vector<8x8xbf16>, vector<8x8xf32> -> vector<8x8xf32>
    %60 = vector.extract_strided_slice %38 {offsets = [0, 0], sizes = [8, 32], strides = [1, 1]} : vector<32x32xf32> to vector<8x32xf32>
    %61 = arith.truncf %59 : vector<8x8xf32> to vector<8x8xbf16>
    %62 = arith.truncf %60 : vector<8x32xf32> to vector<8x32xbf16>
    %cst_34 = arith.constant dense<0.000000e+00> : vector<8x32xf32>
    %63 = tpu.matmul %61, %62, %cst_34 {dimension_numbers = #tpu.dot_dimension_numbers<[1], [0], [0], [1], [0, 0, 1, 1], [], []>} : vector<8x8xbf16>, vector<8x32xbf16>, vector<8x32xf32> -> vector<8x32xf32>
    %64 = vector.extract_strided_slice %20 {offsets = [0, 8], sizes = [8, 8], strides = [1, 1]} : vector<8x32xf32> to vector<8x8xf32>
    %65 = vector.extract_strided_slice %28 {offsets = [0, 8], sizes = [8, 8], strides = [1, 1]} : vector<8x32xf32> to vector<8x8xf32>
    %66 = vector.extract_strided_slice %36 {offsets = [0, 8], sizes = [8, 8], strides = [1, 1]} : vector<8x32xf32> to vector<8x8xf32>
    %67 = arith.truncf %64 : vector<8x8xf32> to vector<8x8xbf16>
    %68 = arith.truncf %65 : vector<8x8xf32> to vector<8x8xbf16>
    %cst_35 = arith.constant dense<0.000000e+00> : vector<8x8xf32>
    %69 = tpu.matmul %67, %68, %cst_35 {dimension_numbers = #tpu.dot_dimension_numbers<[1], [1], [0], [0], [0, 0, 1, 0], [], []>} : vector<8x8xbf16>, vector<8x8xbf16>, vector<8x8xf32> -> vector<8x8xf32>
    %cst_36 = arith.constant 0.353553385 : f32
    %70 = vector.broadcast %cst_36 : f32 to vector<8x8xf32>
    %71 = arith.mulf %69, %70 : vector<8x8xf32>
    %cst_37 = arith.constant dense<0xFF800000> : vector<8xf32>
    %72 = vector.multi_reduction <maximumf>, %71, %cst_37 [1] : vector<8x8xf32> to vector<8xf32>
    %73 = vector.shape_cast %72 : vector<8xf32> to vector<8x1xf32>
    %74 = vector.broadcast %73 : vector<8x1xf32> to vector<8x8xf32>
    %75 = arith.subf %71, %74 : vector<8x8xf32>
    %76 = math.exp %75 : vector<8x8xf32>
    %cst_38 = arith.constant dense<0.000000e+00> : vector<8xf32>
    %77 = vector.multi_reduction <add>, %76, %cst_38 [1] : vector<8x8xf32> to vector<8xf32>
    %78 = vector.shape_cast %77 : vector<8xf32> to vector<8x1xf32>
    %79 = tpu.reciprocal %78 {approx = true} : vector<8x1xf32> -> vector<8x1xf32>
    %80 = vector.broadcast %79 : vector<8x1xf32> to vector<8x8xf32>
    %81 = arith.mulf %76, %80 : vector<8x8xf32>
    %82 = arith.truncf %81 : vector<8x8xf32> to vector<8x8xbf16>
    %83 = arith.truncf %66 : vector<8x8xf32> to vector<8x8xbf16>
    %cst_39 = arith.constant dense<0.000000e+00> : vector<8x8xf32>
    %84 = tpu.matmul %82, %83, %cst_39 {dimension_numbers = #tpu.dot_dimension_numbers<[1], [0], [0], [1], [0, 0, 1, 1], [], []>} : vector<8x8xbf16>, vector<8x8xbf16>, vector<8x8xf32> -> vector<8x8xf32>
    %85 = vector.extract_strided_slice %38 {offsets = [8, 0], sizes = [8, 32], strides = [1, 1]} : vector<32x32xf32> to vector<8x32xf32>
    %86 = arith.truncf %84 : vector<8x8xf32> to vector<8x8xbf16>
    %87 = arith.truncf %85 : vector<8x32xf32> to vector<8x32xbf16>
    %cst_40 = arith.constant dense<0.000000e+00> : vector<8x32xf32>
    %88 = tpu.matmul %86, %87, %cst_40 {dimension_numbers = #tpu.dot_dimension_numbers<[1], [0], [0], [1], [0, 0, 1, 1], [], []>} : vector<8x8xbf16>, vector<8x32xbf16>, vector<8x32xf32> -> vector<8x32xf32>
    %89 = arith.addf %63, %88 : vector<8x32xf32>
    %90 = vector.extract_strided_slice %20 {offsets = [0, 16], sizes = [8, 8], strides = [1, 1]} : vector<8x32xf32> to vector<8x8xf32>
    %91 = vector.extract_strided_slice %28 {offsets = [0, 16], sizes = [8, 8], strides = [1, 1]} : vector<8x32xf32> to vector<8x8xf32>
    %92 = vector.extract_strided_slice %36 {offsets = [0, 16], sizes = [8, 8], strides = [1, 1]} : vector<8x32xf32> to vector<8x8xf32>
    %93 = arith.truncf %90 : vector<8x8xf32> to vector<8x8xbf16>
    %94 = arith.truncf %91 : vector<8x8xf32> to vector<8x8xbf16>
    %cst_41 = arith.constant dense<0.000000e+00> : vector<8x8xf32>
    %95 = tpu.matmul %93, %94, %cst_41 {dimension_numbers = #tpu.dot_dimension_numbers<[1], [1], [0], [0], [0, 0, 1, 0], [], []>} : vector<8x8xbf16>, vector<8x8xbf16>, vector<8x8xf32> -> vector<8x8xf32>
    %cst_42 = arith.constant 0.353553385 : f32
    %96 = vector.broadcast %cst_42 : f32 to vector<8x8xf32>
    %97 = arith.mulf %95, %96 : vector<8x8xf32>
    %cst_43 = arith.constant dense<0xFF800000> : vector<8xf32>
    %98 = vector.multi_reduction <maximumf>, %97, %cst_43 [1] : vector<8x8xf32> to vector<8xf32>
    %99 = vector.shape_cast %98 : vector<8xf32> to vector<8x1xf32>
    %100 = vector.broadcast %99 : vector<8x1xf32> to vector<8x8xf32>
    %101 = arith.subf %97, %100 : vector<8x8xf32>
    %102 = math.exp %101 : vector<8x8xf32>
    %cst_44 = arith.constant dense<0.000000e+00> : vector<8xf32>
    %103 = vector.multi_reduction <add>, %102, %cst_44 [1] : vector<8x8xf32> to vector<8xf32>
    %104 = vector.shape_cast %103 : vector<8xf32> to vector<8x1xf32>
    %105 = tpu.reciprocal %104 {approx = true} : vector<8x1xf32> -> vector<8x1xf32>
    %106 = vector.broadcast %105 : vector<8x1xf32> to vector<8x8xf32>
    %107 = arith.mulf %102, %106 : vector<8x8xf32>
    %108 = arith.truncf %107 : vector<8x8xf32> to vector<8x8xbf16>
    %109 = arith.truncf %92 : vector<8x8xf32> to vector<8x8xbf16>
    %cst_45 = arith.constant dense<0.000000e+00> : vector<8x8xf32>
    %110 = tpu.matmul %108, %109, %cst_45 {dimension_numbers = #tpu.dot_dimension_numbers<[1], [0], [0], [1], [0, 0, 1, 1], [], []>} : vector<8x8xbf16>, vector<8x8xbf16>, vector<8x8xf32> -> vector<8x8xf32>
    %111 = vector.extract_strided_slice %38 {offsets = [16, 0], sizes = [8, 32], strides = [1, 1]} : vector<32x32xf32> to vector<8x32xf32>
    %112 = arith.truncf %110 : vector<8x8xf32> to vector<8x8xbf16>
    %113 = arith.truncf %111 : vector<8x32xf32> to vector<8x32xbf16>
    %cst_46 = arith.constant dense<0.000000e+00> : vector<8x32xf32>
    %114 = tpu.matmul %112, %113, %cst_46 {dimension_numbers = #tpu.dot_dimension_numbers<[1], [0], [0], [1], [0, 0, 1, 1], [], []>} : vector<8x8xbf16>, vector<8x32xbf16>, vector<8x32xf32> -> vector<8x32xf32>
    %115 = arith.addf %89, %114 : vector<8x32xf32>
    %116 = vector.extract_strided_slice %20 {offsets = [0, 24], sizes = [8, 8], strides = [1, 1]} : vector<8x32xf32> to vector<8x8xf32>
    %117 = vector.extract_strided_slice %28 {offsets = [0, 24], sizes = [8, 8], strides = [1, 1]} : vector<8x32xf32> to vector<8x8xf32>
    %118 = vector.extract_strided_slice %36 {offsets = [0, 24], sizes = [8, 8], strides = [1, 1]} : vector<8x32xf32> to vector<8x8xf32>
    %119 = arith.truncf %116 : vector<8x8xf32> to vector<8x8xbf16>
    %120 = arith.truncf %117 : vector<8x8xf32> to vector<8x8xbf16>
    %cst_47 = arith.constant dense<0.000000e+00> : vector<8x8xf32>
    %121 = tpu.matmul %119, %120, %cst_47 {dimension_numbers = #tpu.dot_dimension_numbers<[1], [1], [0], [0], [0, 0, 1, 0], [], []>} : vector<8x8xbf16>, vector<8x8xbf16>, vector<8x8xf32> -> vector<8x8xf32>
    %cst_48 = arith.constant 0.353553385 : f32
    %122 = vector.broadcast %cst_48 : f32 to vector<8x8xf32>
    %123 = arith.mulf %121, %122 : vector<8x8xf32>
    %cst_49 = arith.constant dense<0xFF800000> : vector<8xf32>
    %124 = vector.multi_reduction <maximumf>, %123, %cst_49 [1] : vector<8x8xf32> to vector<8xf32>
    %125 = vector.shape_cast %124 : vector<8xf32> to vector<8x1xf32>
    %126 = vector.broadcast %125 : vector<8x1xf32> to vector<8x8xf32>
    %127 = arith.subf %123, %126 : vector<8x8xf32>
    %128 = math.exp %127 : vector<8x8xf32>
    %cst_50 = arith.constant dense<0.000000e+00> : vector<8xf32>
    %129 = vector.multi_reduction <add>, %128, %cst_50 [1] : vector<8x8xf32> to vector<8xf32>
    %130 = vector.shape_cast %129 : vector<8xf32> to vector<8x1xf32>
    %131 = tpu.reciprocal %130 {approx = true} : vector<8x1xf32> -> vector<8x1xf32>
    %132 = vector.broadcast %131 : vector<8x1xf32> to vector<8x8xf32>
    %133 = arith.mulf %128, %132 : vector<8x8xf32>
    %134 = arith.truncf %133 : vector<8x8xf32> to vector<8x8xbf16>
    %135 = arith.truncf %118 : vector<8x8xf32> to vector<8x8xbf16>
    %cst_51 = arith.constant dense<0.000000e+00> : vector<8x8xf32>
    %136 = tpu.matmul %134, %135, %cst_51 {dimension_numbers = #tpu.dot_dimension_numbers<[1], [0], [0], [1], [0, 0, 1, 1], [], []>} : vector<8x8xbf16>, vector<8x8xbf16>, vector<8x8xf32> -> vector<8x8xf32>
    %137 = vector.extract_strided_slice %38 {offsets = [24, 0], sizes = [8, 32], strides = [1, 1]} : vector<32x32xf32> to vector<8x32xf32>
    %138 = arith.truncf %136 : vector<8x8xf32> to vector<8x8xbf16>
    %139 = arith.truncf %137 : vector<8x32xf32> to vector<8x32xbf16>
    %cst_52 = arith.constant dense<0.000000e+00> : vector<8x32xf32>
    %140 = tpu.matmul %138, %139, %cst_52 {dimension_numbers = #tpu.dot_dimension_numbers<[1], [0], [0], [1], [0, 0, 1, 1], [], []>} : vector<8x8xbf16>, vector<8x32xbf16>, vector<8x32xf32> -> vector<8x32xf32>
    %141 = arith.addf %115, %140 : vector<8x32xf32>
    %142 = vector.extract_strided_slice %12 {offsets = [3, 0], sizes = [1, 32], strides = [1, 1]} : vector<4x32xf32> to vector<1x32xf32>
    %143 = vector.broadcast %142 : vector<1x32xf32> to vector<8x32xf32>
    %144 = arith.addf %141, %143 : vector<8x32xf32>
    %145 = arith.addf %3, %144 : vector<8x32xf32>
    %146 = vector.extract_strided_slice %7 {offsets = [0, 0], sizes = [1, 32], strides = [1, 1]} : vector<3x32xf32> to vector<1x32xf32>
    %147 = vector.extract_strided_slice %9 {offsets = [0, 0], sizes = [1, 32], strides = [1, 1]} : vector<3x32xf32> to vector<1x32xf32>
    %cst_53 = arith.constant dense<0.000000e+00> : vector<8xf32>
    %148 = vector.multi_reduction <add>, %145, %cst_53 [1] : vector<8x32xf32> to vector<8xf32>
    %149 = vector.shape_cast %148 : vector<8xf32> to vector<8x1xf32>
    %cst_54 = arith.constant 3.200000e+01 : f32
    %150 = vector.broadcast %cst_54 : f32 to vector<8x1xf32>
    %151 = arith.divf %149, %150 : vector<8x1xf32>
    %152 = vector.broadcast %151 : vector<8x1xf32> to vector<8x32xf32>
    %153 = arith.subf %145, %152 : vector<8x32xf32>
    %154 = arith.mulf %153, %153 : vector<8x32xf32>
    %cst_55 = arith.constant dense<0.000000e+00> : vector<8xf32>
    %155 = vector.multi_reduction <add>, %154, %cst_55 [1] : vector<8x32xf32> to vector<8xf32>
    %156 = vector.shape_cast %155 : vector<8xf32> to vector<8x1xf32>
    %cst_56 = arith.constant 3.200000e+01 : f32
    %157 = vector.broadcast %cst_56 : f32 to vector<8x1xf32>
    %158 = arith.divf %156, %157 : vector<8x1xf32>
    %159 = vector.broadcast %151 : vector<8x1xf32> to vector<8x32xf32>
    %160 = arith.subf %145, %159 : vector<8x32xf32>
    %cst_57 = arith.constant 9.99999974E-6 : f32
    %161 = vector.broadcast %cst_57 : f32 to vector<8x1xf32>
    %162 = arith.addf %158, %161 : vector<8x1xf32>
    %163 = math.rsqrt %162 : vector<8x1xf32>
    %164 = vector.broadcast %163 : vector<8x1xf32> to vector<8x32xf32>
    %165 = arith.mulf %160, %164 : vector<8x32xf32>
    %166 = vector.broadcast %146 : vector<1x32xf32> to vector<8x32xf32>
    %167 = arith.mulf %165, %166 : vector<8x32xf32>
    %168 = vector.broadcast %147 : vector<1x32xf32> to vector<8x32xf32>
    %169 = arith.addf %167, %168 : vector<8x32xf32>
    %c0_58 = arith.constant 0 : index
    %c0_59 = arith.constant 0 : index
    %c0_60 = arith.constant 0 : index
    %170 = vector.load %arg4[%c0_58, %c0_59, %c0_60] : memref<1x16x32xf32, #tpu.memory_space<vmem>>, vector<1x16x32xf32>
    %171 = vector.shape_cast %170 : vector<1x16x32xf32> to vector<16x32xf32>
    %c0_61 = arith.constant 0 : index
    %c0_62 = arith.constant 0 : index
    %c0_63 = arith.constant 0 : index
    %172 = vector.load %arg5[%c0_61, %c0_62, %c0_63] : memref<1x16x32xf32, #tpu.memory_space<vmem>>, vector<1x16x32xf32>
    %173 = vector.shape_cast %172 : vector<1x16x32xf32> to vector<16x32xf32>
    %174 = arith.addf %169, %5 : vector<8x32xf32>
    %c0_64 = arith.constant 0 : index
    %c0_65 = arith.constant 0 : index
    %c0_66 = arith.constant 0 : index
    %175 = vector.load %arg9[%c0_64, %c0_65, %c0_66] : memref<1x4x32xf32, #tpu.memory_space<vmem>>, vector<1x4x32xf32>
    %176 = vector.shape_cast %175 : vector<1x4x32xf32> to vector<4x32xf32>
    %c0_67 = arith.constant 0 : index
    %c0_68 = arith.constant 0 : index
    %c0_69 = arith.constant 0 : index
    %c0_70 = arith.constant 0 : index
    %177 = vector.load %arg8[%c0_67, %c0_68, %c0_69, %c0_70] : memref<1x4x32x32xf32, #tpu.memory_space<vmem>>, vector<1x1x32x32xf32>
    %178 = vector.shape_cast %177 : vector<1x1x32x32xf32> to vector<32x32xf32>
    %179 = arith.truncf %174 : vector<8x32xf32> to vector<8x32xbf16>
    %180 = arith.truncf %178 : vector<32x32xf32> to vector<32x32xbf16>
    %cst_71 = arith.constant dense<0.000000e+00> : vector<8x32xf32>
    %181 = tpu.matmul %179, %180, %cst_71 {dimension_numbers = #tpu.dot_dimension_numbers<[1], [0], [0], [1], [0, 0, 1, 1], [], []>} : vector<8x32xbf16>, vector<32x32xbf16>, vector<8x32xf32> -> vector<8x32xf32>
    %182 = vector.extract_strided_slice %176 {offsets = [0, 0], sizes = [1, 32], strides = [1, 1]} : vector<4x32xf32> to vector<1x32xf32>
    %183 = vector.broadcast %182 : vector<1x32xf32> to vector<8x32xf32>
    %184 = arith.addf %181, %183 : vector<8x32xf32>
    %c0_72 = arith.constant 0 : index
    %c1_73 = arith.constant 1 : index
    %c0_74 = arith.constant 0 : index
    %c0_75 = arith.constant 0 : index
    %185 = vector.load %arg8[%c0_72, %c1_73, %c0_74, %c0_75] : memref<1x4x32x32xf32, #tpu.memory_space<vmem>>, vector<1x1x32x32xf32>
    %186 = vector.shape_cast %185 : vector<1x1x32x32xf32> to vector<32x32xf32>
    %187 = arith.truncf %173 : vector<16x32xf32> to vector<16x32xbf16>
    %188 = arith.truncf %186 : vector<32x32xf32> to vector<32x32xbf16>
    %cst_76 = arith.constant dense<0.000000e+00> : vector<16x32xf32>
    %189 = tpu.matmul %187, %188, %cst_76 {dimension_numbers = #tpu.dot_dimension_numbers<[1], [0], [0], [1], [0, 0, 1, 1], [], []>} : vector<16x32xbf16>, vector<32x32xbf16>, vector<16x32xf32> -> vector<16x32xf32>
    %190 = vector.extract_strided_slice %176 {offsets = [1, 0], sizes = [1, 32], strides = [1, 1]} : vector<4x32xf32> to vector<1x32xf32>
    %191 = vector.broadcast %190 : vector<1x32xf32> to vector<16x32xf32>
    %192 = arith.addf %189, %191 : vector<16x32xf32>
    %c0_77 = arith.constant 0 : index
    %c2_78 = arith.constant 2 : index
    %c0_79 = arith.constant 0 : index
    %c0_80 = arith.constant 0 : index
    %193 = vector.load %arg8[%c0_77, %c2_78, %c0_79, %c0_80] : memref<1x4x32x32xf32, #tpu.memory_space<vmem>>, vector<1x1x32x32xf32>
    %194 = vector.shape_cast %193 : vector<1x1x32x32xf32> to vector<32x32xf32>
    %195 = arith.truncf %171 : vector<16x32xf32> to vector<16x32xbf16>
    %196 = arith.truncf %194 : vector<32x32xf32> to vector<32x32xbf16>
    %cst_81 = arith.constant dense<0.000000e+00> : vector<16x32xf32>
    %197 = tpu.matmul %195, %196, %cst_81 {dimension_numbers = #tpu.dot_dimension_numbers<[1], [0], [0], [1], [0, 0, 1, 1], [], []>} : vector<16x32xbf16>, vector<32x32xbf16>, vector<16x32xf32> -> vector<16x32xf32>
    %198 = vector.extract_strided_slice %176 {offsets = [2, 0], sizes = [1, 32], strides = [1, 1]} : vector<4x32xf32> to vector<1x32xf32>
    %199 = vector.broadcast %198 : vector<1x32xf32> to vector<16x32xf32>
    %200 = arith.addf %197, %199 : vector<16x32xf32>
    %c0_82 = arith.constant 0 : index
    %c3_83 = arith.constant 3 : index
    %c0_84 = arith.constant 0 : index
    %c0_85 = arith.constant 0 : index
    %201 = vector.load %arg8[%c0_82, %c3_83, %c0_84, %c0_85] : memref<1x4x32x32xf32, #tpu.memory_space<vmem>>, vector<1x1x32x32xf32>
    %202 = vector.shape_cast %201 : vector<1x1x32x32xf32> to vector<32x32xf32>
    %203 = vector.extract_strided_slice %184 {offsets = [0, 0], sizes = [8, 8], strides = [1, 1]} : vector<8x32xf32> to vector<8x8xf32>
    %204 = vector.extract_strided_slice %192 {offsets = [0, 0], sizes = [16, 8], strides = [1, 1]} : vector<16x32xf32> to vector<16x8xf32>
    %205 = vector.extract_strided_slice %200 {offsets = [0, 0], sizes = [16, 8], strides = [1, 1]} : vector<16x32xf32> to vector<16x8xf32>
    %206 = arith.truncf %203 : vector<8x8xf32> to vector<8x8xbf16>
    %207 = arith.truncf %204 : vector<16x8xf32> to vector<16x8xbf16>
    %cst_86 = arith.constant dense<0.000000e+00> : vector<8x16xf32>
    %208 = tpu.matmul %206, %207, %cst_86 {dimension_numbers = #tpu.dot_dimension_numbers<[1], [1], [0], [0], [0, 0, 1, 0], [], []>} : vector<8x8xbf16>, vector<16x8xbf16>, vector<8x16xf32> -> vector<8x16xf32>
    %cst_87 = arith.constant 0.353553385 : f32
    %209 = vector.broadcast %cst_87 : f32 to vector<8x16xf32>
    %210 = arith.mulf %208, %209 : vector<8x16xf32>
    %cst_88 = arith.constant dense<0xFF800000> : vector<8xf32>
    %211 = vector.multi_reduction <maximumf>, %210, %cst_88 [1] : vector<8x16xf32> to vector<8xf32>
    %212 = vector.shape_cast %211 : vector<8xf32> to vector<8x1xf32>
    %213 = vector.broadcast %212 : vector<8x1xf32> to vector<8x16xf32>
    %214 = arith.subf %210, %213 : vector<8x16xf32>
    %215 = math.exp %214 : vector<8x16xf32>
    %cst_89 = arith.constant dense<0.000000e+00> : vector<8xf32>
    %216 = vector.multi_reduction <add>, %215, %cst_89 [1] : vector<8x16xf32> to vector<8xf32>
    %217 = vector.shape_cast %216 : vector<8xf32> to vector<8x1xf32>
    %218 = tpu.reciprocal %217 {approx = true} : vector<8x1xf32> -> vector<8x1xf32>
    %219 = vector.broadcast %218 : vector<8x1xf32> to vector<8x16xf32>
    %220 = arith.mulf %215, %219 : vector<8x16xf32>
    %221 = arith.truncf %220 : vector<8x16xf32> to vector<8x16xbf16>
    %222 = arith.truncf %205 : vector<16x8xf32> to vector<16x8xbf16>
    %cst_90 = arith.constant dense<0.000000e+00> : vector<8x8xf32>
    %223 = tpu.matmul %221, %222, %cst_90 {dimension_numbers = #tpu.dot_dimension_numbers<[1], [0], [0], [1], [0, 0, 1, 1], [], []>} : vector<8x16xbf16>, vector<16x8xbf16>, vector<8x8xf32> -> vector<8x8xf32>
    %224 = vector.extract_strided_slice %202 {offsets = [0, 0], sizes = [8, 32], strides = [1, 1]} : vector<32x32xf32> to vector<8x32xf32>
    %225 = arith.truncf %223 : vector<8x8xf32> to vector<8x8xbf16>
    %226 = arith.truncf %224 : vector<8x32xf32> to vector<8x32xbf16>
    %cst_91 = arith.constant dense<0.000000e+00> : vector<8x32xf32>
    %227 = tpu.matmul %225, %226, %cst_91 {dimension_numbers = #tpu.dot_dimension_numbers<[1], [0], [0], [1], [0, 0, 1, 1], [], []>} : vector<8x8xbf16>, vector<8x32xbf16>, vector<8x32xf32> -> vector<8x32xf32>
    %228 = vector.extract_strided_slice %184 {offsets = [0, 8], sizes = [8, 8], strides = [1, 1]} : vector<8x32xf32> to vector<8x8xf32>
    %229 = vector.extract_strided_slice %192 {offsets = [0, 8], sizes = [16, 8], strides = [1, 1]} : vector<16x32xf32> to vector<16x8xf32>
    %230 = vector.extract_strided_slice %200 {offsets = [0, 8], sizes = [16, 8], strides = [1, 1]} : vector<16x32xf32> to vector<16x8xf32>
    %231 = arith.truncf %228 : vector<8x8xf32> to vector<8x8xbf16>
    %232 = arith.truncf %229 : vector<16x8xf32> to vector<16x8xbf16>
    %cst_92 = arith.constant dense<0.000000e+00> : vector<8x16xf32>
    %233 = tpu.matmul %231, %232, %cst_92 {dimension_numbers = #tpu.dot_dimension_numbers<[1], [1], [0], [0], [0, 0, 1, 0], [], []>} : vector<8x8xbf16>, vector<16x8xbf16>, vector<8x16xf32> -> vector<8x16xf32>
    %cst_93 = arith.constant 0.353553385 : f32
    %234 = vector.broadcast %cst_93 : f32 to vector<8x16xf32>
    %235 = arith.mulf %233, %234 : vector<8x16xf32>
    %cst_94 = arith.constant dense<0xFF800000> : vector<8xf32>
    %236 = vector.multi_reduction <maximumf>, %235, %cst_94 [1] : vector<8x16xf32> to vector<8xf32>
    %237 = vector.shape_cast %236 : vector<8xf32> to vector<8x1xf32>
    %238 = vector.broadcast %237 : vector<8x1xf32> to vector<8x16xf32>
    %239 = arith.subf %235, %238 : vector<8x16xf32>
    %240 = math.exp %239 : vector<8x16xf32>
    %cst_95 = arith.constant dense<0.000000e+00> : vector<8xf32>
    %241 = vector.multi_reduction <add>, %240, %cst_95 [1] : vector<8x16xf32> to vector<8xf32>
    %242 = vector.shape_cast %241 : vector<8xf32> to vector<8x1xf32>
    %243 = tpu.reciprocal %242 {approx = true} : vector<8x1xf32> -> vector<8x1xf32>
    %244 = vector.broadcast %243 : vector<8x1xf32> to vector<8x16xf32>
    %245 = arith.mulf %240, %244 : vector<8x16xf32>
    %246 = arith.truncf %245 : vector<8x16xf32> to vector<8x16xbf16>
    %247 = arith.truncf %230 : vector<16x8xf32> to vector<16x8xbf16>
    %cst_96 = arith.constant dense<0.000000e+00> : vector<8x8xf32>
    %248 = tpu.matmul %246, %247, %cst_96 {dimension_numbers = #tpu.dot_dimension_numbers<[1], [0], [0], [1], [0, 0, 1, 1], [], []>} : vector<8x16xbf16>, vector<16x8xbf16>, vector<8x8xf32> -> vector<8x8xf32>
    %249 = vector.extract_strided_slice %202 {offsets = [8, 0], sizes = [8, 32], strides = [1, 1]} : vector<32x32xf32> to vector<8x32xf32>
    %250 = arith.truncf %248 : vector<8x8xf32> to vector<8x8xbf16>
    %251 = arith.truncf %249 : vector<8x32xf32> to vector<8x32xbf16>
    %cst_97 = arith.constant dense<0.000000e+00> : vector<8x32xf32>
    %252 = tpu.matmul %250, %251, %cst_97 {dimension_numbers = #tpu.dot_dimension_numbers<[1], [0], [0], [1], [0, 0, 1, 1], [], []>} : vector<8x8xbf16>, vector<8x32xbf16>, vector<8x32xf32> -> vector<8x32xf32>
    %253 = arith.addf %227, %252 : vector<8x32xf32>
    %254 = vector.extract_strided_slice %184 {offsets = [0, 16], sizes = [8, 8], strides = [1, 1]} : vector<8x32xf32> to vector<8x8xf32>
    %255 = vector.extract_strided_slice %192 {offsets = [0, 16], sizes = [16, 8], strides = [1, 1]} : vector<16x32xf32> to vector<16x8xf32>
    %256 = vector.extract_strided_slice %200 {offsets = [0, 16], sizes = [16, 8], strides = [1, 1]} : vector<16x32xf32> to vector<16x8xf32>
    %257 = arith.truncf %254 : vector<8x8xf32> to vector<8x8xbf16>
    %258 = arith.truncf %255 : vector<16x8xf32> to vector<16x8xbf16>
    %cst_98 = arith.constant dense<0.000000e+00> : vector<8x16xf32>
    %259 = tpu.matmul %257, %258, %cst_98 {dimension_numbers = #tpu.dot_dimension_numbers<[1], [1], [0], [0], [0, 0, 1, 0], [], []>} : vector<8x8xbf16>, vector<16x8xbf16>, vector<8x16xf32> -> vector<8x16xf32>
    %cst_99 = arith.constant 0.353553385 : f32
    %260 = vector.broadcast %cst_99 : f32 to vector<8x16xf32>
    %261 = arith.mulf %259, %260 : vector<8x16xf32>
    %cst_100 = arith.constant dense<0xFF800000> : vector<8xf32>
    %262 = vector.multi_reduction <maximumf>, %261, %cst_100 [1] : vector<8x16xf32> to vector<8xf32>
    %263 = vector.shape_cast %262 : vector<8xf32> to vector<8x1xf32>
    %264 = vector.broadcast %263 : vector<8x1xf32> to vector<8x16xf32>
    %265 = arith.subf %261, %264 : vector<8x16xf32>
    %266 = math.exp %265 : vector<8x16xf32>
    %cst_101 = arith.constant dense<0.000000e+00> : vector<8xf32>
    %267 = vector.multi_reduction <add>, %266, %cst_101 [1] : vector<8x16xf32> to vector<8xf32>
    %268 = vector.shape_cast %267 : vector<8xf32> to vector<8x1xf32>
    %269 = tpu.reciprocal %268 {approx = true} : vector<8x1xf32> -> vector<8x1xf32>
    %270 = vector.broadcast %269 : vector<8x1xf32> to vector<8x16xf32>
    %271 = arith.mulf %266, %270 : vector<8x16xf32>
    %272 = arith.truncf %271 : vector<8x16xf32> to vector<8x16xbf16>
    %273 = arith.truncf %256 : vector<16x8xf32> to vector<16x8xbf16>
    %cst_102 = arith.constant dense<0.000000e+00> : vector<8x8xf32>
    %274 = tpu.matmul %272, %273, %cst_102 {dimension_numbers = #tpu.dot_dimension_numbers<[1], [0], [0], [1], [0, 0, 1, 1], [], []>} : vector<8x16xbf16>, vector<16x8xbf16>, vector<8x8xf32> -> vector<8x8xf32>
    %275 = vector.extract_strided_slice %202 {offsets = [16, 0], sizes = [8, 32], strides = [1, 1]} : vector<32x32xf32> to vector<8x32xf32>
    %276 = arith.truncf %274 : vector<8x8xf32> to vector<8x8xbf16>
    %277 = arith.truncf %275 : vector<8x32xf32> to vector<8x32xbf16>
    %cst_103 = arith.constant dense<0.000000e+00> : vector<8x32xf32>
    %278 = tpu.matmul %276, %277, %cst_103 {dimension_numbers = #tpu.dot_dimension_numbers<[1], [0], [0], [1], [0, 0, 1, 1], [], []>} : vector<8x8xbf16>, vector<8x32xbf16>, vector<8x32xf32> -> vector<8x32xf32>
    %279 = arith.addf %253, %278 : vector<8x32xf32>
    %280 = vector.extract_strided_slice %184 {offsets = [0, 24], sizes = [8, 8], strides = [1, 1]} : vector<8x32xf32> to vector<8x8xf32>
    %281 = vector.extract_strided_slice %192 {offsets = [0, 24], sizes = [16, 8], strides = [1, 1]} : vector<16x32xf32> to vector<16x8xf32>
    %282 = vector.extract_strided_slice %200 {offsets = [0, 24], sizes = [16, 8], strides = [1, 1]} : vector<16x32xf32> to vector<16x8xf32>
    %283 = arith.truncf %280 : vector<8x8xf32> to vector<8x8xbf16>
    %284 = arith.truncf %281 : vector<16x8xf32> to vector<16x8xbf16>
    %cst_104 = arith.constant dense<0.000000e+00> : vector<8x16xf32>
    %285 = tpu.matmul %283, %284, %cst_104 {dimension_numbers = #tpu.dot_dimension_numbers<[1], [1], [0], [0], [0, 0, 1, 0], [], []>} : vector<8x8xbf16>, vector<16x8xbf16>, vector<8x16xf32> -> vector<8x16xf32>
    %cst_105 = arith.constant 0.353553385 : f32
    %286 = vector.broadcast %cst_105 : f32 to vector<8x16xf32>
    %287 = arith.mulf %285, %286 : vector<8x16xf32>
    %cst_106 = arith.constant dense<0xFF800000> : vector<8xf32>
    %288 = vector.multi_reduction <maximumf>, %287, %cst_106 [1] : vector<8x16xf32> to vector<8xf32>
    %289 = vector.shape_cast %288 : vector<8xf32> to vector<8x1xf32>
    %290 = vector.broadcast %289 : vector<8x1xf32> to vector<8x16xf32>
    %291 = arith.subf %287, %290 : vector<8x16xf32>
    %292 = math.exp %291 : vector<8x16xf32>
    %cst_107 = arith.constant dense<0.000000e+00> : vector<8xf32>
    %293 = vector.multi_reduction <add>, %292, %cst_107 [1] : vector<8x16xf32> to vector<8xf32>
    %294 = vector.shape_cast %293 : vector<8xf32> to vector<8x1xf32>
    %295 = tpu.reciprocal %294 {approx = true} : vector<8x1xf32> -> vector<8x1xf32>
    %296 = vector.broadcast %295 : vector<8x1xf32> to vector<8x16xf32>
    %297 = arith.mulf %292, %296 : vector<8x16xf32>
    %298 = arith.truncf %297 : vector<8x16xf32> to vector<8x16xbf16>
    %299 = arith.truncf %282 : vector<16x8xf32> to vector<16x8xbf16>
    %cst_108 = arith.constant dense<0.000000e+00> : vector<8x8xf32>
    %300 = tpu.matmul %298, %299, %cst_108 {dimension_numbers = #tpu.dot_dimension_numbers<[1], [0], [0], [1], [0, 0, 1, 1], [], []>} : vector<8x16xbf16>, vector<16x8xbf16>, vector<8x8xf32> -> vector<8x8xf32>
    %301 = vector.extract_strided_slice %202 {offsets = [24, 0], sizes = [8, 32], strides = [1, 1]} : vector<32x32xf32> to vector<8x32xf32>
    %302 = arith.truncf %300 : vector<8x8xf32> to vector<8x8xbf16>
    %303 = arith.truncf %301 : vector<8x32xf32> to vector<8x32xbf16>
    %cst_109 = arith.constant dense<0.000000e+00> : vector<8x32xf32>
    %304 = tpu.matmul %302, %303, %cst_109 {dimension_numbers = #tpu.dot_dimension_numbers<[1], [0], [0], [1], [0, 0, 1, 1], [], []>} : vector<8x8xbf16>, vector<8x32xbf16>, vector<8x32xf32> -> vector<8x32xf32>
    %305 = arith.addf %279, %304 : vector<8x32xf32>
    %306 = vector.extract_strided_slice %176 {offsets = [3, 0], sizes = [1, 32], strides = [1, 1]} : vector<4x32xf32> to vector<1x32xf32>
    %307 = vector.broadcast %306 : vector<1x32xf32> to vector<8x32xf32>
    %308 = arith.addf %305, %307 : vector<8x32xf32>
    %309 = arith.addf %169, %308 : vector<8x32xf32>
    %310 = vector.extract_strided_slice %7 {offsets = [1, 0], sizes = [1, 32], strides = [1, 1]} : vector<3x32xf32> to vector<1x32xf32>
    %311 = vector.extract_strided_slice %9 {offsets = [1, 0], sizes = [1, 32], strides = [1, 1]} : vector<3x32xf32> to vector<1x32xf32>
    %cst_110 = arith.constant dense<0.000000e+00> : vector<8xf32>
    %312 = vector.multi_reduction <add>, %309, %cst_110 [1] : vector<8x32xf32> to vector<8xf32>
    %313 = vector.shape_cast %312 : vector<8xf32> to vector<8x1xf32>
    %cst_111 = arith.constant 3.200000e+01 : f32
    %314 = vector.broadcast %cst_111 : f32 to vector<8x1xf32>
    %315 = arith.divf %313, %314 : vector<8x1xf32>
    %316 = vector.broadcast %315 : vector<8x1xf32> to vector<8x32xf32>
    %317 = arith.subf %309, %316 : vector<8x32xf32>
    %318 = arith.mulf %317, %317 : vector<8x32xf32>
    %cst_112 = arith.constant dense<0.000000e+00> : vector<8xf32>
    %319 = vector.multi_reduction <add>, %318, %cst_112 [1] : vector<8x32xf32> to vector<8xf32>
    %320 = vector.shape_cast %319 : vector<8xf32> to vector<8x1xf32>
    %cst_113 = arith.constant 3.200000e+01 : f32
    %321 = vector.broadcast %cst_113 : f32 to vector<8x1xf32>
    %322 = arith.divf %320, %321 : vector<8x1xf32>
    %323 = vector.broadcast %315 : vector<8x1xf32> to vector<8x32xf32>
    %324 = arith.subf %309, %323 : vector<8x32xf32>
    %cst_114 = arith.constant 9.99999974E-6 : f32
    %325 = vector.broadcast %cst_114 : f32 to vector<8x1xf32>
    %326 = arith.addf %322, %325 : vector<8x1xf32>
    %327 = math.rsqrt %326 : vector<8x1xf32>
    %328 = vector.broadcast %327 : vector<8x1xf32> to vector<8x32xf32>
    %329 = arith.mulf %324, %328 : vector<8x32xf32>
    %330 = vector.broadcast %310 : vector<1x32xf32> to vector<8x32xf32>
    %331 = arith.mulf %329, %330 : vector<8x32xf32>
    %332 = vector.broadcast %311 : vector<1x32xf32> to vector<8x32xf32>
    %333 = arith.addf %331, %332 : vector<8x32xf32>
    %c0_115 = arith.constant 0 : index
    %c0_116 = arith.constant 0 : index
    %c0_117 = arith.constant 0 : index
    %334 = vector.load %arg12[%c0_115, %c0_116, %c0_117] : memref<1x32x64xf32, #tpu.memory_space<vmem>>, vector<1x32x64xf32>
    %335 = vector.shape_cast %334 : vector<1x32x64xf32> to vector<32x64xf32>
    %336 = arith.truncf %333 : vector<8x32xf32> to vector<8x32xbf16>
    %337 = arith.truncf %335 : vector<32x64xf32> to vector<32x64xbf16>
    %cst_118 = arith.constant dense<0.000000e+00> : vector<8x64xf32>
    %338 = tpu.matmul %336, %337, %cst_118 {dimension_numbers = #tpu.dot_dimension_numbers<[1], [0], [0], [1], [0, 0, 1, 1], [], []>} : vector<8x32xbf16>, vector<32x64xbf16>, vector<8x64xf32> -> vector<8x64xf32>
    %c0_119 = arith.constant 0 : index
    %c0_120 = arith.constant 0 : index
    %c0_121 = arith.constant 0 : index
    %339 = vector.load %arg13[%c0_119, %c0_120, %c0_121] : memref<1x1x64xf32, #tpu.memory_space<vmem>>, vector<1x1x64xf32>
    %340 = vector.shape_cast %339 : vector<1x1x64xf32> to vector<1x64xf32>
    %341 = vector.broadcast %340 : vector<1x64xf32> to vector<8x64xf32>
    %342 = arith.addf %338, %341 : vector<8x64xf32>
    %cst_122 = arith.constant 0.000000e+00 : f32
    %343 = vector.broadcast %cst_122 : f32 to vector<8x64xf32>
    %344 = arith.maximumf %342, %343 : vector<8x64xf32>
    %c0_123 = arith.constant 0 : index
    %c0_124 = arith.constant 0 : index
    %c0_125 = arith.constant 0 : index
    %345 = vector.load %arg14[%c0_123, %c0_124, %c0_125] : memref<1x64x32xf32, #tpu.memory_space<vmem>>, vector<1x64x32xf32>
    %346 = vector.shape_cast %345 : vector<1x64x32xf32> to vector<64x32xf32>
    %347 = arith.truncf %344 : vector<8x64xf32> to vector<8x64xbf16>
    %348 = arith.truncf %346 : vector<64x32xf32> to vector<64x32xbf16>
    %cst_126 = arith.constant dense<0.000000e+00> : vector<8x32xf32>
    %349 = tpu.matmul %347, %348, %cst_126 {dimension_numbers = #tpu.dot_dimension_numbers<[1], [0], [0], [1], [0, 0, 1, 1], [], []>} : vector<8x64xbf16>, vector<64x32xbf16>, vector<8x32xf32> -> vector<8x32xf32>
    %c0_127 = arith.constant 0 : index
    %c0_128 = arith.constant 0 : index
    %c0_129 = arith.constant 0 : index
    %350 = vector.load %arg15[%c0_127, %c0_128, %c0_129] : memref<1x1x32xf32, #tpu.memory_space<vmem>>, vector<1x1x32xf32>
    %351 = vector.shape_cast %350 : vector<1x1x32xf32> to vector<1x32xf32>
    %352 = vector.broadcast %351 : vector<1x32xf32> to vector<8x32xf32>
    %353 = arith.addf %349, %352 : vector<8x32xf32>
    %354 = arith.addf %333, %353 : vector<8x32xf32>
    %355 = vector.extract_strided_slice %7 {offsets = [2, 0], sizes = [1, 32], strides = [1, 1]} : vector<3x32xf32> to vector<1x32xf32>
    %356 = vector.extract_strided_slice %9 {offsets = [2, 0], sizes = [1, 32], strides = [1, 1]} : vector<3x32xf32> to vector<1x32xf32>
    %cst_130 = arith.constant dense<0.000000e+00> : vector<8xf32>
    %357 = vector.multi_reduction <add>, %354, %cst_130 [1] : vector<8x32xf32> to vector<8xf32>
    %358 = vector.shape_cast %357 : vector<8xf32> to vector<8x1xf32>
    %cst_131 = arith.constant 3.200000e+01 : f32
    %359 = vector.broadcast %cst_131 : f32 to vector<8x1xf32>
    %360 = arith.divf %358, %359 : vector<8x1xf32>
    %361 = vector.broadcast %360 : vector<8x1xf32> to vector<8x32xf32>
    %362 = arith.subf %354, %361 : vector<8x32xf32>
    %363 = arith.mulf %362, %362 : vector<8x32xf32>
    %cst_132 = arith.constant dense<0.000000e+00> : vector<8xf32>
    %364 = vector.multi_reduction <add>, %363, %cst_132 [1] : vector<8x32xf32> to vector<8xf32>
    %365 = vector.shape_cast %364 : vector<8xf32> to vector<8x1xf32>
    %cst_133 = arith.constant 3.200000e+01 : f32
    %366 = vector.broadcast %cst_133 : f32 to vector<8x1xf32>
    %367 = arith.divf %365, %366 : vector<8x1xf32>
    %368 = vector.broadcast %360 : vector<8x1xf32> to vector<8x32xf32>
    %369 = arith.subf %354, %368 : vector<8x32xf32>
    %cst_134 = arith.constant 9.99999974E-6 : f32
    %370 = vector.broadcast %cst_134 : f32 to vector<8x1xf32>
    %371 = arith.addf %367, %370 : vector<8x1xf32>
    %372 = math.rsqrt %371 : vector<8x1xf32>
    %373 = vector.broadcast %372 : vector<8x1xf32> to vector<8x32xf32>
    %374 = arith.mulf %369, %373 : vector<8x32xf32>
    %375 = vector.broadcast %355 : vector<1x32xf32> to vector<8x32xf32>
    %376 = arith.mulf %374, %375 : vector<8x32xf32>
    %377 = vector.broadcast %356 : vector<1x32xf32> to vector<8x32xf32>
    %378 = arith.addf %376, %377 : vector<8x32xf32>
    %c0_135 = arith.constant 0 : index
    %c0_136 = arith.constant 0 : index
    %379 = vector.load %arg19[%c0_135, %c0_136] : memref<8x32xf32, #tpu.memory_space<vmem>>, vector<8x32xf32>
    tpu.vector_store %arg19[%c0_135, %c0_136], %378 {strides = array<i32>} : memref<8x32xf32, #tpu.memory_space<vmem>>, vector<8x32xf32>,
    %c0_137 = arith.constant 0 : index
    %c0_138 = arith.constant 0 : index
    %380 = vector.load %arg16[%c0_137, %c0_138] : memref<1x32xf32, #tpu.memory_space<vmem>>, vector<1x32xf32>
    %c0_139 = arith.constant 0 : index
    %c0_140 = arith.constant 0 : index
    %381 = vector.load %arg17[%c0_139, %c0_140] : memref<1x32xf32, #tpu.memory_space<vmem>>, vector<1x32xf32>
    %cst_141 = arith.constant dense<0.000000e+00> : vector<8xf32>
    %382 = vector.multi_reduction <add>, %378, %cst_141 [1] : vector<8x32xf32> to vector<8xf32>
    %383 = vector.shape_cast %382 : vector<8xf32> to vector<8x1xf32>
    %cst_142 = arith.constant 3.200000e+01 : f32
    %384 = vector.broadcast %cst_142 : f32 to vector<8x1xf32>
    %385 = arith.divf %383, %384 : vector<8x1xf32>
    %386 = vector.broadcast %385 : vector<8x1xf32> to vector<8x32xf32>
    %387 = arith.subf %378, %386 : vector<8x32xf32>
    %388 = arith.mulf %387, %387 : vector<8x32xf32>
    %cst_143 = arith.constant dense<0.000000e+00> : vector<8xf32>
    %389 = vector.multi_reduction <add>, %388, %cst_143 [1] : vector<8x32xf32> to vector<8xf32>
    %390 = vector.shape_cast %389 : vector<8xf32> to vector<8x1xf32>
    %cst_144 = arith.constant 3.200000e+01 : f32
    %391 = vector.broadcast %cst_144 : f32 to vector<8x1xf32>
    %392 = arith.divf %390, %391 : vector<8x1xf32>
    %393 = vector.broadcast %385 : vector<8x1xf32> to vector<8x32xf32>
    %394 = arith.subf %378, %393 : vector<8x32xf32>
    %cst_145 = arith.constant 9.99999974E-6 : f32
    %395 = vector.broadcast %cst_145 : f32 to vector<8x1xf32>
    %396 = arith.addf %392, %395 : vector<8x1xf32>
    %397 = math.rsqrt %396 : vector<8x1xf32>
    %398 = vector.broadcast %397 : vector<8x1xf32> to vector<8x32xf32>
    %399 = arith.mulf %394, %398 : vector<8x32xf32>
    %400 = vector.broadcast %380 : vector<1x32xf32> to vector<8x32xf32>
    %401 = arith.mulf %399, %400 : vector<8x32xf32>
    %402 = vector.broadcast %381 : vector<1x32xf32> to vector<8x32xf32>
    %403 = arith.addf %401, %402 : vector<8x32xf32>
    %c0_146 = arith.constant 0 : index
    %c0_147 = arith.constant 0 : index
    %c0_148 = arith.constant 0 : index
    %c0_149 = arith.constant 0 : index
    %404 = vector.load %arg18[%c0_146, %c0_147, %c0_148, %c0_149] : memref<1x1x8x32xf32, #tpu.memory_space<vmem>>, vector<1x1x8x32xf32>
    %405 = vector.shape_cast %404 : vector<1x1x8x32xf32> to vector<8x32xf32>
    %406 = vector.shape_cast %403 : vector<8x32xf32> to vector<1x1x8x32xf32>
    tpu.vector_store %arg18[%c0_146, %c0_147, %c0_148, %c0_149], %406 {strides = array<i32>} : memref<1x1x8x32xf32, #tpu.memory_space<vmem>>, vector<1x1x8x32xf32>,
    return
  }
  func.func @transform_0(%arg0: i32, %arg1: i32) -> (i32, i32, i32) {
    %c0_i32 = arith.constant 0 : i32
    %c0_i32_0 = arith.constant 0 : i32
    %c0_i32_1 = arith.constant 0 : i32
    return %arg0, %c0_i32, %c0_i32_0 : i32, i32, i32
  }
  func.func @transform_1(%arg0: i32, %arg1: i32) -> (i32, i32, i32) {
    %c0_i32 = arith.constant 0 : i32
    %c0_i32_0 = arith.constant 0 : i32
    %c0_i32_1 = arith.constant 0 : i32
    return %arg0, %c0_i32, %c0_i32_0 : i32, i32, i32
  }
  func.func @transform_2(%arg0: i32, %arg1: i32) -> (i32, i32, i32) {
    %c0_i32 = arith.constant 0 : i32
    %c0_i32_0 = arith.constant 0 : i32
    %c0_i32_1 = arith.constant 0 : i32
    return %arg0, %c0_i32, %c0_i32_0 : i32, i32, i32
  }
  func.func @transform_3(%arg0: i32, %arg1: i32) -> (i32, i32, i32) {
    %c0_i32 = arith.constant 0 : i32
    %c0_i32_0 = arith.constant 0 : i32
    %c0_i32_1 = arith.constant 0 : i32
    return %arg0, %c0_i32, %c0_i32_0 : i32, i32, i32
  }
  func.func @transform_4(%arg0: i32, %arg1: i32) -> (i32, i32, i32, i32) {
    %c0_i32 = arith.constant 0 : i32
    %c0_i32_0 = arith.constant 0 : i32
    %c0_i32_1 = arith.constant 0 : i32
    %c0_i32_2 = arith.constant 0 : i32
    return %arg1, %c0_i32, %c0_i32_0, %c0_i32_1 : i32, i32, i32, i32
  }
  func.func @transform_5(%arg0: i32, %arg1: i32) -> (i32, i32, i32) {
    %c0_i32 = arith.constant 0 : i32
    %c0_i32_0 = arith.constant 0 : i32
    %c0_i32_1 = arith.constant 0 : i32
    return %arg1, %c0_i32, %c0_i32_0 : i32, i32, i32
  }
  func.func @transform_6(%arg0: i32, %arg1: i32) -> (i32, i32, i32, i32) {
    %c0_i32 = arith.constant 0 : i32
    %c0_i32_0 = arith.constant 0 : i32
    %c0_i32_1 = arith.constant 0 : i32
    %c0_i32_2 = arith.constant 0 : i32
    return %arg1, %c0_i32, %c0_i32_0, %c0_i32_1 : i32, i32, i32, i32
  }
  func.func @transform_7(%arg0: i32, %arg1: i32) -> (i32, i32, i32) {
    %c0_i32 = arith.constant 0 : i32
    %c0_i32_0 = arith.constant 0 : i32
    %c0_i32_1 = arith.constant 0 : i32
    return %arg1, %c0_i32, %c0_i32_0 : i32, i32, i32
  }
  func.func @transform_8(%arg0: i32, %arg1: i32) -> (i32, i32, i32) {
    %c0_i32 = arith.constant 0 : i32
    %c0_i32_0 = arith.constant 0 : i32
    %c0_i32_1 = arith.constant 0 : i32
    return %arg1, %c0_i32, %c0_i32_0 : i32, i32, i32
  }
  func.func @transform_9(%arg0: i32, %arg1: i32) -> (i32, i32, i32) {
    %c0_i32 = arith.constant 0 : i32
    %c0_i32_0 = arith.constant 0 : i32
    %c0_i32_1 = arith.constant 0 : i32
    return %arg1, %c0_i32, %c0_i32_0 : i32, i32, i32
  }
  func.func @transform_10(%arg0: i32, %arg1: i32) -> (i32, i32, i32) {
    %c0_i32 = arith.constant 0 : i32
    %c0_i32_0 = arith.constant 0 : i32
    %c0_i32_1 = arith.constant 0 : i32
    return %arg1, %c0_i32, %c0_i32_0 : i32, i32, i32
  }
  func.func @transform_11(%arg0: i32, %arg1: i32) -> (i32, i32, i32) {
    %c0_i32 = arith.constant 0 : i32
    %c0_i32_0 = arith.constant 0 : i32
    %c0_i32_1 = arith.constant 0 : i32
    return %arg1, %c0_i32, %c0_i32_0 : i32, i32, i32
  }
  func.func @transform_12(%arg0: i32, %arg1: i32) -> (i32, i32, i32) {
    %c0_i32 = arith.constant 0 : i32
    %c0_i32_0 = arith.constant 0 : i32
    %c0_i32_1 = arith.constant 0 : i32
    return %arg1, %c0_i32, %c0_i32_0 : i32, i32, i32
  }
  func.func @transform_13(%arg0: i32, %arg1: i32) -> (i32, i32, i32) {
    %c0_i32 = arith.constant 0 : i32
    %c0_i32_0 = arith.constant 0 : i32
    %c0_i32_1 = arith.constant 0 : i32
    return %arg1, %c0_i32, %c0_i32_0 : i32, i32, i32
  }
  func.func @transform_14(%arg0: i32, %arg1: i32) -> (i32, i32) {
    %c0_i32 = arith.constant 0 : i32
    %c0_i32_0 = arith.constant 0 : i32
    %c0_i32_1 = arith.constant 0 : i32
    return %c0_i32, %c0_i32_0 : i32, i32
  }
  func.func @transform_15(%arg0: i32, %arg1: i32) -> (i32, i32) {
    %c0_i32 = arith.constant 0 : i32
    %c0_i32_0 = arith.constant 0 : i32
    %c0_i32_1 = arith.constant 0 : i32
    return %c0_i32, %c0_i32_0 : i32, i32
  }
  func.func @transform_16(%arg0: i32, %arg1: i32) -> (i32, i32, i32, i32) {
    %c0_i32 = arith.constant 0 : i32
    %c0_i32_0 = arith.constant 0 : i32
    %c0_i32_1 = arith.constant 0 : i32
    return %arg1, %arg0, %c0_i32, %c0_i32_0 : i32, i32, i32, i32
  }
}

</mosaic_0001>

<bundles_post_ra>
// kernel: tpu_custom_call.1
= control target key start
LH: loop header
LB: loop body
LE: loop exit
PB: predicated region body
PF: predicated region fallthrough
CT: control target
= control target key end

     0   :  { %s4430_s0 = inlined_call_operand.vmem [shape: f32[2,8,32], index: 0, kind: input, shape index: {}]   ;;  %s4431_s1 = inlined_call_operand.vmem [shape: f32[2,8,32], index: 1, kind: input, shape index: {}]   ;;  %s4432_s2 = inlined_call_operand.vmem [shape: f32[2,16,32], index: 2, kind: input, shape index: {}]   ;;  %s4433_s3 = inlined_call_operand.vmem [shape: f32[2,16,32], index: 3, kind: input, shape index: {}]   ;;  %s4434_s4 = inlined_call_operand.hbm [shape: f32[2,4,32,32], index: 4, kind: input, shape index: {}]   ;;  %s4435_s5 = inlined_call_operand.vmem [shape: f32[2,4,32], index: 5, kind: input, shape index: {}]   ;;  %s4436_s6 = inlined_call_operand.hbm [shape: f32[2,4,32,32], index: 6, kind: input, shape index: {}]   ;;  %s4437_s7 = inlined_call_operand.vmem [shape: f32[2,4,32], index: 7, kind: input, shape index: {}]   ;;  %s4438_s8 = inlined_call_operand.vmem [shape: f32[2,3,32], index: 8, kind: input, shape index: {}]   ;;  %s4439_s9 = inlined_call_operand.vmem [shape: f32[2,3,32], index: 9, kind: input, shape index: {}]   ;;  %s4440_s10 = inlined_call_operand.vmem [shape: f32[2,32,64], index: 10, kind: input, shape index: {}]   ;;  %s4441_s11 = inlined_call_operand.vmem [shape: f32[2,1,64], index: 11, kind: input, shape index: {}]   ;;  %s4442_s12 = inlined_call_operand.vmem [shape: f32[2,64,32], index: 12, kind: input, shape index: {}]   ;;  %s4443_s13 = inlined_call_operand.vmem [shape: f32[2,1,32], index: 13, kind: input, shape index: {}]   ;;  %s4444_s14 = inlined_call_operand.vmem [shape: f32[1,32], index: 14, kind: input, shape index: {}]   ;;  %s4445_s15 = inlined_call_operand.vmem [shape: f32[1,32], index: 15, kind: input, shape index: {}]   ;;  %s4446_s16 = inlined_call_operand.hbm [shape: f32[2,2,8,32], index: 16, kind: output, shape index: {}]  }
   0x1   :  { %4467 = sst [smem:[#allocation29_spill]] %s4430_s0 }
   0x2   :  { %4468 = sst [smem:[#allocation30_spill]] %s4431_s1 }
   0x3   :  { %4469 = sst [smem:[#allocation31_spill]] %s4432_s2 }
   0x4   :  { %4470 = sst [smem:[#allocation32_spill]] %s4433_s3 }
   0x5   :  { %4471 = sst [smem:[#allocation33_spill]] %s4434_s4 }
   0x6   :  { %4472 = sst [smem:[#allocation34_spill]] %s4436_s6 }
   0x7   :  { %4473 = sst [smem:[#allocation35_spill]] %s4437_s7 }
   0x8   :  { %4474 = sst [smem:[#allocation36_spill]] %s4438_s8 }
   0x9   :  { %4475 = sst [smem:[#allocation37_spill]] %s4439_s9 }
   0xa   :  { %4476 = sst [smem:[#allocation38_spill]] %s4440_s10 }
   0xb   :  { %4477 = sst [smem:[#allocation39_spill]] %s4441_s11 }
   0xc   :  { %4478 = sst [smem:[#allocation40_spill]] %s4442_s12 }
   0xd   :  { %4479 = sst [smem:[#allocation41_spill]] %s4443_s13 }
   0xe   :  { %4480 = sst [smem:[#allocation42_spill]] %s4444_s14 }
   0xf   :  { %4481 = sst [smem:[#allocation43_spill]] %s4445_s15 }
  0x10   :  { %4482 = sst [smem:[#allocation44_spill]] %s4446_s16 }
  0x11   :  { %21 = vsyncpa [#allocation4], 0 }
  0x12   :  { %23 = vsyncpa [#allocation4 + $0x1], 0 }
  0x13   :  { %24 = vsyncpa [#allocation7], 0 }
  0x14   :  { %26 = vsyncpa [#allocation7 + $0x1], 0 }
  0x15   :  { %27 = vsyncpa [#allocation5], 0 }
  0x16   :  { %29 = vsyncpa [#allocation5 + $0x1], 0  ;;  %s3744_s21 = smov 0   ;;  %s3746_s22 = smov 0  }
  0x17   :  { %s3748_s23 = smov 0   ;;  %s3750_s24 = smov 0  }
  0x18   :  { %s3752_s25 = smov 0   ;;  %s3754_s26 = smov 0  }
  0x19   :  { %s3756_s27 = smov 0   ;;  %s3758_s28 = smov 0  }
  0x1a   :  { %s3760_s29 = smov 0   ;;  %s3762_s30 = smov 0  }
  0x1b   :  { %s3764_s0 = smov 0  }
  0x1c LB: > { %4483 = sst [smem:[#allocation12_spill]] %s3607_s21  ;;  %s2927_s17 = sadd.s32 4294967295, %s3647_s0   ;;  %s3647_s0 = sphi %s3764_s0, %s35_s0   ;;  %s3643_s30 = sphi %s3762_s30, %s4550_s30   ;;  %s3639_s29 = sphi %s3760_s29, %s4549_s29   ;;  %s3635_s28 = sphi %s3758_s28, %s4548_s28   ;;  %s3631_s27 = sphi %s3756_s27, %s4547_s27   ;;  %s3627_s26 = sphi %s3754_s26, %s4546_s26   ;;  %s3623_s25 = sphi %s3752_s25, %s4545_s25   ;;  %s3619_s24 = sphi %s3750_s24, %s4544_s24   ;;  %s3615_s23 = sphi %s3748_s23, %s4543_s23   ;;  %s3611_s22 = sphi %s3746_s22, %s4542_s22   ;;  %s3607_s21 = sphi %s3744_s21, %s4541_s21  }
  0x1d   : > { %4484 = sst [smem:[#allocation13_spill]] %s3611_s22  ;;  %s2928_s18 = sadd.s32 4294967294, %s3647_s0  }
  0x1e   : > { %4485 = sst [smem:[#allocation14_spill]] %s3615_s23  ;;  %s44_s19 = sadd.s32 1, %s3639_s29 }
  0x1f   : > { %4486 = sst [smem:[#allocation15_spill]] %s3623_s25  ;;  %s47_s20 = sadd.s32 1, %s3643_s30 }
  0x20   : > { %4487 = sst [smem:[#allocation16_spill]] %s3627_s26  ;;  %p45_p0 = scmp.ge.s32.totalorder %s44_s19, 2 }
  0x21   : > { %4488 = sst [smem:[#allocation17_spill]] %s3635_s28  ;;  %s158_s16 = sadd.s32 1, %s3627_s26 }
  0x22   : > { %4489 = sst [smem:[#allocation18_spill]] %s3639_s29  ;;  %p165_p1 = scmp.ne.s32.totalorder %s3627_s26, %s3623_s25 }
  0x23   : > { %4490 = sst [smem:[#allocation19_spill]] %s3643_s30  ;;  %p166_p2 = scmp.eq.s32.totalorder %s3647_s0, 0 }
  0x24   : > { %4491 = sst [smem:[#allocation20_spill]] %s3647_s0  ;;  %s4552_s19 = smov (%p45_p0, %s44_s19), 0 }
  0x25   : > { %4492 = sst [smem:[#allocation21_spill]] %s4552_s19  ;;  %s4554_s20 = smov (!%p45_p0, %s47_s20), %s3643_s30 }
  0x26   : > { %s155_s15 = ssub.s32 %s3639_s29, %s4552_s19  ;;  %p3810_p3 = por %p166_p2, %p165_p1 }
  0x27   : > { %p49_p4 = scmp.ge.s32.totalorder %s4554_s20, 2  ;;  %p156_p5 = scmp.eq.s32.totalorder %s155_s15, 0 }
  0x28   : > { %p171_p6 = scmp.ne.s32.totalorder %s3623_s25, %s3619_s24  ;;  %p172_p7 = scmp.eq.s32.totalorder %s2927_s17, 0 }
  0x29   : > { %s4556_s20 = smov (%p49_p4, %s4554_s20), 0  ;;  %s462_s10 = sadd.s32 1, %s3615_s23 }
  0x2a   : > { %4494 = sst [smem:[#allocation22_spill]] %s4556_s20  ;;  %p3820_p8 = por %p172_p7, %p171_p6 }
  0x2b   : > { %s3818_s12 = scalar_select %p156_p5, %s3627_s26, %s158_s16  }
  0x2c   : > { %s458_s19 = ssub.s32 %s3643_s30, %s4556_s20  ;;  %p472_p10 = scmp.ne.s32.totalorder %s3615_s23, %s3611_s22 }
  0x2d   : > { %4495 = sst [smem:[#allocation23_spill]] %s3818_s12  ;;  %s459_s11 = sor.u32 %s458_s19, %s155_s15 }
  0x2e   : > { %p460_p9 = scmp.eq.s32.totalorder %s459_s11, 0  ;;  %p473_p11 = scmp.eq.s32.totalorder %s2927_s17, 3 }
  0x2f   : > { %p478_p12 = scmp.ne.s32.totalorder %s3611_s22, %s3607_s21  ;;  %p479_p0 = scmp.eq.s32.totalorder %s2928_s18, 3 }
  0x30   : > { %s3832_s24 = scalar_select %p460_p9, %s3615_s23, %s462_s10  }
  0x31   : > { %p3834_p13 = por %p473_p11, %p472_p10  ;;  %p3330_p1 = scmp.lt.s32.totalorder %s3647_s0, 4 }
  0x32   : > { %4497 = sst [smem:[#allocation24_spill]] %s3832_s24  ;;  %p3839_p2 = por %p479_p0, %p478_p12 }
  0x33   : > { %s4498_s16 = scalar_select %p3834_p13, 1, 0 }
  0x34   : > { %s4500_s12 = scalar_select %p3839_p2, 1, 0 }
  0x35   : > { %4499 = sst [smem:[#allocation25_spill]] %s4498_s16  ;;  %s3844_s15 = sand.u32 1, %s3627_s26  }
  0x36   : > { %4501 = sst [smem:[#allocation26_spill]] %s4500_s12  ;;  %s4453_s11 = sshll.u32 %s3844_s15, 7 }
  0x37   : > { %s3021_s17 = sshll.u32 %s3639_s29, 11  ;;  %s4502_s4 = sld [smem:[#allocation33_spill]] }
  0x38   : > { %s539_s30 = scalar_lea.vmem [#allocation3], %s4453_s11  ;;  %p3857_p4 = pnand %p3330_p1, %p3810_p3 }
  0x39   : > { %s546_s18 = sshll.u32 %s539_s30, 4  ;;  %p2937_p5 = scmp.ge.s32.totalorder %s3647_s0, 1  ;;  %s547_s18 = int_to_ptr.vmem [resolvable:$true] %s546_s18 }
  0x3a   : > { %s536_s26 = scalar_lea.sflag [#allocation4], %s3844_s15  ;;  %p3469_p6 = pneg %p3857_p4 }
  0x3b   : > { %s3480_s23 = scalar_lea.vmem %s547_s18, 2048  ;;  %s3649_s10 = smov [#allocation3]  }
  0x3c   : > { %p3481_p7 = scmp.ne.s32.totalorder %s547_s18, %s3480_s23  ;;  %s3485_s30 = sshll.u32 %s3649_s10, 4  ;;  %s3486_s30 = int_to_ptr.vmem [resolvable:$false] %s3485_s30 }
  0x3d   : > { %s545_s20 = scalar_lea.hbm %s4502_s4, %s3021_s17  ;;  %s3487_s14 = scalar_lea.vmem %s3486_s30, 4096 }
  0x3e   : > { %p3483_p9 = pnand %p3481_p7, %p3469_p6  ;;  %p3488_p3 = scmp.lt.s32.totalorder %s547_s18, %s3486_s30 }
  0x3f   : > { %p3489_p11 = scmp.lt.s32.totalorder %s3487_s14, %s3480_s23 }
  0x40   : > { %p3484_p10 = pneg %p3483_p9 }
  0x41   : > { %p3490_p12 = por %p3489_p11, %p3488_p3 }
  0x43   : > { %p3491_p0 = pnand %p3490_p12, %p3484_p10 }
  0x45   : > { %3494 = shalt.err (!%p3491_p0)
}
  0x46   : > { %s3650_s19 = smov 128   ;;  %s3651_s11 = smov 8  }
  0x47   : > { %3322 = dma.hbm_to_vmem [thread:$0]  (!%p3857_p4), %s545_s20, 2048, %s547_s18, %s536_s26, %s3650_s19, %s3650_s19, %s3651_s11  }
  0x48   : > { %p631_p1 = scmp.lt.s32.totalorder %s3647_s0, 5  ;;  %s4504_s6 = sld [smem:[#allocation34_spill]] }
  0x49   : > { %s4506_s14 = sshll.u32 %s3844_s15, 7  ;;  %s564_s16 = scalar_lea.sflag [#allocation7], %s3844_s15 }
  0x4a   : > { %p3878_p7 = pnand %p2937_p5, %p631_p1  ;;  %s567_s12 = scalar_lea.vmem [#allocation6], %s4506_s14 }
  0x4b   : > { %s574_s21 = sshll.u32 %s567_s12, 4  ;;  %s3652_s26 = smov [#allocation6]   ;;  %s575_s21 = int_to_ptr.vmem [resolvable:$true] %s574_s21 }
  0x4c   : > { %s3508_s9 = scalar_lea.vmem %s575_s21, 2048  ;;  %s3513_s20 = sshll.u32 %s3652_s26, 4  ;;  %s3514_s20 = int_to_ptr.vmem [resolvable:$false] %s3513_s20 }
  0x4d   : > { %p3509_p9 = scmp.ne.s32.totalorder %s575_s21, %s3508_s9  ;;  %s3515_s4 = scalar_lea.vmem %s3514_s20, 4096 }
  0x4e   : > { %s573_s23 = scalar_lea.hbm %s4504_s6, %s3021_s17  ;;  %p3516_p11 = scmp.lt.s32.totalorder %s575_s21, %s3514_s20 }
  0x4f   : > { %p3511_p10 = pnand %p3509_p9, %p3469_p6  ;;  %p3517_p5 = scmp.lt.s32.totalorder %s3515_s4, %s3508_s9 }
  0x51   : > { %p3512_p3 = pneg %p3511_p10  ;;  %p3518_p12 = por %p3517_p5, %p3516_p11 }
  0x53   : > { %p3519_p0 = pnand %p3518_p12, %p3512_p3 }
  0x55   : > { %3522 = shalt.err (!%p3519_p0)
}
  0x56   : > { %3325 = dma.hbm_to_vmem [thread:$0]  (!%p3857_p4), %s573_s23, 2048, %s575_s21, %s564_s16, %s3650_s19, %s3650_s19, %s3651_s11  }
  0x57   : > { %635 = sbr.rel (%p3878_p7) target bundleno = 6676 (0x1a14), region = 84 }
  0x5c   : > { %s637_s12 = sand.u32 1, %s3623_s25  }
  0x5d   : > { %s2938_s15 = sshll.u32 %s637_s12, 7  ;;  %s638_s17 = scalar_lea.sflag [#allocation4], %s637_s12 }
  0x5e   : > { %s3893_s18 = scalar_lea.vmem [#allocation3], %s2938_s15 }
  0x5f   : > { %3594 = dma.done.wait (%p3820_p8), %s638_s17, 2048  }
  0x60   : > { %3596 = vsyncadd (%p3820_p8), %s638_s17, 4294965248  ;;  %s647_s9 = scalar_lea.sflag [#allocation7], %s637_s12  ;;  %s3899_s10 = scalar_lea.vmem [#allocation6], %s2938_s15 }
  0x61   : > { %3598 = dma.done.wait (%p3820_p8), %s647_s9, 2048  }
  0x62   : > { %3600 = vsyncadd (%p3820_p8), %s647_s9, 4294965248  ;;  %s4458_s21 = sand.u32 1, %s3611_s22   ;;  %p754_p4 = scmp.lt.s32.totalorder %s3635_s28, 1 }
  0x63   : > { %s3909_s24 = sshll.u32 %s4458_s21, 3  ;;  %p772_p6 = scmp.lt.s32.totalorder %s3631_s27, 1 }
  0x64   : > { %s755_s16 = scalar_select %p754_p4, %s3635_s28, 1 }
  0x65   : > { %s3914_s11 = scalar_select %p772_p6, %s3631_s27, 1 }
  0x66   : > { %s2941_s13 = sshll.u32 %s755_s16, 3  ;;  %s3023_s19 = sshll.u32 %s755_s16, 4 }
  0x67   : > { %s4507_s14 = sld [smem:[#allocation29_spill]]  ;;  %s3935_s16 = sshll.u32 %s3914_s11, 2 }
  0x68   : > { %s4508_s1 = sld [smem:[#allocation30_spill]]  ;;  %s3025_s23 = sshll.u32 %s3914_s11, 5 }
  0x69   : > { %s4509_s2 = sld [smem:[#allocation31_spill]]  ;;  %p2955_p8 = scmp.ne.s32.totalorder %s3631_s27, 0 }
  0x6a   : > { %s4511_s3 = sld [smem:[#allocation32_spill]] }
  0x6b   : > { %s4516_s22 = sld [smem:[#allocation38_spill]] }
  0x6c   : > { %s4518_s15 = sld [smem:[#allocation41_spill]] }
  0x6d   : > { %s757_s26 = scalar_lea.vmem %s4507_s14, %s2941_s13  ;;  %s4519_s6 = sld [smem:[#allocation40_spill]] }
  0x6e   : > { %s3922_s12 = scalar_lea.vmem %s4508_s1, %s2941_s13  ;;  %s4517_s13 = sld [smem:[#allocation39_spill]] }
  0x6f   : > { %s3927_s9 = scalar_lea.vmem %s4509_s2, %s3023_s19  ;;  %s4515_s2 = sld [smem:[#allocation37_spill]] }
  0x70   : > { %4510 = sst [smem:[#allocation27_spill]] %s3927_s9  ;;  %s3932_s29 = scalar_lea.vmem %s4511_s3, %s3023_s19 }
  0x71   : > { %4512 = sst [smem:[#allocation28_spill]] %s3932_s29  ;;  %s3957_s28 = scalar_lea.vmem %s4516_s22, %s3025_s23 }
  0x72   : > { %s3026_s29 = sshll.u32 %s3914_s11, 6  ;;  %s803_s7 = scalar_lea.vmem %s4518_s15, %s3914_s11 }
  0x73   : > { %s3971_s8 = scalar_lea.vmem %s4519_s6, %s3026_s29  ;;  %808 = sbr.rel (%p2955_p8) target bundleno = 122 (0x7a), region = 96 }
  0x74   : > { %s795_s14 = scalar_lea.vmem %s4517_s13, %s3914_s11 }
  0x75   : > { %s787_s3 = scalar_lea.vmem %s4515_s2, %s3935_s16  ;;  %s753_s2 = scalar_lea.vmem [#allocation8], %s3909_s24 }
  0x78   : > { %v809_v0 = vld [vmem:[%s757_s26] sm:$0xff]  ;;  %vm810_vm0 = vcmask 261120  }
  0x79   : > { %811 = vst.msk [vmem:[#allocation2] sm:$0xff] %vm810_vm0, %v809_v0 }
  0x7a PF: > { %v2959_v1 = vld [vmem:[%s3893_s18 + $0x30] sm:$0xff]  ;;  %v2960_v2 = vld [vmem:[%s3893_s18 + $0x38] sm:$0xff]  ;;  %v3653_v4 = vmov 0.0   ;;  %v2957_v7 = vld [vmem:[%s3893_s18 + $0x20] sm:$0xff]  ;;  %vm3654_vm1 = vmmov 0   ;;  %vm829_vm2 = vcmask 261120   ;;  %v825_v18 = vlaneseq  ;;  %s4520_s29 = scalar_lea.vmem %s4435_s5, %s3935_s16 }
  0x7b   : > { %v820_v3 = vld [vmem:[%s3893_s18 + $0x10] sm:$0xff]  ;;  %3109 = vmatprep.subr.bf16.mxu1 %v3653_v4  ;;  %v879_v5 = vpack.c.bf16 %v2960_v2, %v2959_v1  ;;  %3101 = vmatprep.subr.bf16.mxu0 %v3653_v4  ;;  %v821_v6 = vld [vmem:[%s3893_s18 + $0x18] sm:$0xff]  ;;  %v2958_v8 = vld [vmem:[%s3893_s18 + $0x28] sm:$0xff]  ;;  %vm986_vm3 = vcmask 64512   ;;  %s3655_s0 = smov 120   ;;  %vm1050_vm4 = vcmask 1043456  }
  0x7c   : > { %v824_v9 = vpack.c.bf16 %v821_v6, %v820_v3  ;;  %3113 = vmatprep.mubr.msk.bf16.mxu1 %vm3654_vm1, %v3653_v4  ;;  %v818_v10 = vld [vmem:[%s3893_s18] sm:$0xff]  ;;  %v819_v11 = vld [vmem:[%s3893_s18 + $0x8] sm:$0xff]  ;;  %3105 = vmatprep.mubr.msk.bf16.mxu0 %vm3654_vm1, %v3653_v4  ;;  %v878_v13 = vpack.c.bf16 %v2958_v8, %v2957_v7  ;;  %v3992_v14 = vld [vmem:[%s3922_s12] sm:$0xff]  ;;  %v4006_v19 = vshrl.u32 %v825_v18, 7  ;;  %s3656_s26 = smov 112   ;;  %s3657_s12 = smov 104  }
  0x7d   : > { %3110 = vmatpush3.bf16.msra.mxu1 %v879_v5  ;;  %v823_v15 = vpack.c.bf16 %v819_v11, %v818_v10  ;;  %v4016_v21 = vld [vmem:[%s4520_s29] sm:$0xf]  ;;  %v2964_v38 = vld [vmem:[%s3893_s18 + $0x50] sm:$0xff]  ;;  %v2962_v40 = vld [vmem:[%s3893_s18 + $0x40] sm:$0xff]  ;;  %s4522_s15 = sld [smem:[#allocation36_spill]]  ;;  %vm1880_vm5 = vcmask 130048  }
  0x7e   : > { %3102 = vmatpush3.bf16.msra.mxu0 %v824_v9  ;;  %3111 = vmatprep.subr.bf16.mxu1 %v3653_v4  ;;  %v4009_v20 = vsub.s32 1, %v4006_v19  ;;  %v4019_v22 = vsub.s32 0, %v4006_v19  ;;  %v2965_v39 = vld [vmem:[%s3893_s18 + $0x58] sm:$0xff]  ;;  %v2963_v42 = vld [vmem:[%s3893_s18 + $0x48] sm:$0xff]  ;;  %v4060_v6 = vsub.s32 2, %v4006_v19  ;;  %s4525_s20 = sld [smem:[#allocation35_spill]] }
  0x7f   : > { %3103 = vmatprep.subr.bf16.mxu0 %v3653_v4  ;;  %v931_v41 = vpack.c.bf16 %v2965_v39, %v2964_v38  ;;  %v930_v43 = vpack.c.bf16 %v2963_v42, %v2962_v40  ;;  %vm2568_vm6 = vcmask 523264   ;;  %s3017_s11 = sshll.u32 %s3631_s27, 1  ;;  %s4534_s23 = sld [smem:[#allocation43_spill]] }
  0x80   : > { %v3987_v12 = vld [vmem:[#allocation2] sm:$0xff]  ;;  %v883_v23 = vrot.slane %v4016_v21, %v4009_v20  ;;  %v828_v24 = vrot.slane %v4016_v21, %v4019_v22  ;;  %v935_v7 = vrot.slane %v4016_v21, %v4060_v6  ;;  %s4535_s27 = sld [smem:[#allocation44_spill]] }
  0x81   : > { %v816_v16 = vadd.f32 %v3992_v14, %v3987_v12  ;;  %3112 = vmatpush3.bf16.msra.mxu1 %v878_v13  ;;  %v929_v44 = vpack.c.bf16 %v3987_v12, %v3987_v12 }
  0x82   : > { %3104 = vmatpush3.bf16.msra.mxu0 %v823_v15  ;;  %3125 = vmatprep.subr.bf16.mxu1 %v3653_v4 }
  0x83   : > { %v822_v17 = vpack.c.bf16 %v816_v16, %v816_v16  ;;  %3117 = vmatprep.subr.bf16.mxu0 %v3653_v4  ;;  %s4523_s6 = scalar_lea.vmem %s4522_s15, %s3935_s16 }
  0x84   : > { %s4526_s4 = scalar_lea.vmem %s4525_s20, %s3935_s16  ;;  %s4527_s16 = sld [smem:[#allocation27_spill]] }
  0x85   : > { %3114 = vmatmul.mubr.msk.bf16.vlgmr.msra.gmra.mxu1 %vm829_vm2, %v822_v17  ;;  %3106 = vmatmul.mubr.msk.bf16.vlgmr.msra.gmra.mxu0 %vm829_vm2, %v822_v17 }
  0x86   : > { %3127 = vmatprep.mubr.msk.bf16.mxu1 %vm3654_vm1, %v3653_v4  ;;  %3121 = vmatprep.mubr.msk.bf16.mxu0 %vm3654_vm1, %v3653_v4 }
  0x87   : > { %3118 = vmatpush3.bf16.msra.mxu0 %v931_v41 }
  0x88   : > { %3119 = vmatprep.subr.bf16.mxu0 %v3653_v4 }
  0x8b   : > { %3120 = vmatpush3.bf16.msra.mxu0 %v930_v43 }
  0x8c   : > { %3131 = vmatprep.subr.bf16.mxu0 %v3653_v4 }
  0x8e   : > { %3122 = vmatmul.mubr.msk.bf16.vlgmr.msra.gmra.mxu0 %vm829_vm2, %v929_v44 }
  0x8f   : > { %3133 = vmatprep.mubr.msk.bf16.mxu0 %vm3654_vm1, %v3653_v4 }
 0x145   : > { %v918_v25 = vpop.f32.mrf.mxu1  ;;  %v867_v27 = vpop.f32.mrf.mxu0 }
 0x146   : > { %v919_v26 = vadd.f32 %v918_v25, %v883_v23  ;;  %v868_v29 = vadd.f32 %v867_v27, %v828_v24 }
 0x147   : > { %v3115_v28 = vpop.f32.mrf.mxu1  ;;  %v3107_v31 = vpop.f32.mrf.mxu0 }
 0x148   : > { %v4025_v30 = vpack.c.bf16 %v919_v26, %v919_v26  ;;  %v4027_v33 = vpack.c.bf16 %v868_v29, %v868_v29  ;;  %v2968_v26 = vld [vmem:[%s3893_s18 + $0x68] sm:$0xff] }
 0x149   : > { %v921_v32 = vpop.f32.mrf.mxu1  ;;  %v870_v35 = vpop.f32.mrf.mxu0  ;;  %v1211_v27 = vpack.c.bf16 %v2968_v26, %v2968_v26 }
 0x14a   : > { %1100 = vrot.lane.b32.xlu0 %v4025_v30, %s3655_s0  ;;  %v991_v34 = vsel %vm986_vm3, %v4025_v30, 0 }
 0x14b   : > { %v3116_v36 = vpop.f32.mrf.mxu1  ;;  %3126 = vmatpush3.bf16.xpose.msra.mxu1 %v991_v34  ;;  %v3108_v37 = vpop.f32.mrf.mxu0  ;;  %v1216_v28 = vsel %vm1050_vm4, %v1211_v27, 0  ;;  %v2967_v34 = vld [vmem:[%s3893_s18 + $0x60] sm:$0xff] }
 0x14c   : > { %3137 = vmatprep.subr.bf16.mxu1 %v3653_v4  ;;  %v1095_v35 = vpack.c.bf16 %v2967_v34, %v2967_v34 }
 0x14e   : > { %1097 = vrot.lane.b32.xlu0 %v4027_v33, %s3655_s0  ;;  %v973_v63 = vpop.f32.mrf.mxu0  ;;  %v1262_v39 = vsel %vm1050_vm4, %v1095_v35, 0 }
 0x14f   : > { %v974_v8 = vadd.f32 %v973_v63, %v935_v7 }
 0x150   : > { %v3123_v0 = vpop.f32.mrf.mxu0 }
 0x151   : > { %v4064_v9 = vpack.c.bf16 %v974_v8, %v974_v8 }
 0x152   : > { %3128 = vmatmul.mubr.msk.bf16.vlgmr.msra.gmra.mxu1 %vm986_vm3, %v4027_v33  ;;  %v976_v1 = vpop.f32.mrf.mxu0 }
 0x153   : > { %3139 = vmatprep.mubr.msk.bf16.mxu1 %vm3654_vm1, %v3653_v4  ;;  %v1052_v10 = vsel %vm1050_vm4, %v4064_v9, 0 }
 0x154   : > { %v3124_v2 = vpop.f32.mrf.mxu0  ;;  %3132 = vmatpush3.bf16.msra.mxu0 %v1052_v10 }
 0x155   : > { %3143 = vmatprep.subr.bf16.mxu0 %v3653_v4 }
 0x1bc   : > { %v1101_v45 = vpop.permute.xlu0 %1100 }
 0x1bd   : > { %v1106_v46 = vsel %vm986_vm3, %v1101_v45, 0 }
 0x1be   : > { %3138 = vmatpush3.bf16.xpose.msra.mxu1 %v1106_v46 }
 0x1bf   : > { %3149 = vmatprep.subr.bf16.mxu1 %v3653_v4 }
 0x1c0   : > { %v1098_v47 = vpop.permute.xlu0 %1097 }
 0x1c5   : > { %3140 = vmatmul.mubr.msk.bf16.vlgmr.msra.gmra.mxu1 %vm986_vm3, %v1098_v47 }
 0x1c6   : > { %3151 = vmatprep.mubr.msk.bf16.mxu1 %vm3654_vm1, %v3653_v4  ;;  %3150 = vmatpush3.bf16.msra.mxu1 %v1216_v28 }
 0x1c7   : > { %3161 = vmatprep.subr.bf16.mxu1 %v3653_v4 }
 0x212   : > { %v1027_v48 = vpop.f32.mrf.mxu1 }
 0x213   : > { %v1033_v49 = vmul.f32 0.35355338, %v1027_v48 }
 0x214   : > { %v3129_v50 = vpop.f32.mrf.mxu1 }
 0x215   : > { %v1034_v51 = vsel %vm986_vm3, %v1033_v49, -inf }
 0x216   : > { %1035 = vmax.xlane.f32.xlu1 %v1034_v51  ;;  %v1030_v52 = vpop.f32.mrf.mxu1 }
 0x218   : > { %v3130_v53 = vpop.f32.mrf.mxu1 }
 0x285   : > { %v1142_v54 = vpop.f32.mrf.mxu1 }
 0x286   : > { %v1148_v55 = vmul.f32 0.35355338, %v1142_v54 }
 0x287   : > { %v3141_v56 = vpop.f32.mrf.mxu1 }
 0x288   : > { %v1149_v57 = vsel %vm986_vm3, %v1148_v55, -inf }
 0x289   : > { %1150 = vmax.xlane.f32.xlu1 %v1149_v57  ;;  %v1145_v58 = vpop.f32.mrf.mxu1 }
 0x28b   : > { %v3142_v59 = vpop.f32.mrf.mxu1 }
 0x29f   : > { %v1036_v60 = vpop.xlane.xlu1 %1035 }
 0x2a0   : > { %v1037_v61 = vsub.f32 %v1033_v49, %v1036_v60 }
 0x2a2   : > { %v1038_v62 = vmul.f32 1.442695, %v1037_v61 }
 0x2a4   : > { %3427 = vpow2.f32 %v1038_v62 }
 0x2b1   : > { %v3428_v3 = vpop.eup %3427 }
 0x2b2   : > { %v1040_v5 = vsel %vm986_vm3, %v3428_v3, 0.0 }
 0x2b3   : > { %1041 = vadd.xlane.f32.xlu0 %v1040_v5 }
 0x2c9   : > { %1367 = vrot.lane.b32.xlu0 %v4064_v9, %s3656_s26 }
 0x312   : > { %v1151_v11 = vpop.xlane.xlu1 %1150 }
 0x313   : > { %v1152_v13 = vsub.f32 %v1148_v55, %v1151_v11 }
 0x315   : > { %v1153_v15 = vmul.f32 1.442695, %v1152_v13 }
 0x317   : > { %3429 = vpow2.f32 %v1153_v15 }
 0x324   : > { %v3430_v16 = vpop.eup %3429 }
 0x325   : > { %v1155_v17 = vsel %vm986_vm3, %v3430_v16, 0.0 }
 0x326   : > { %1156 = vadd.xlane.f32.xlu1 %v1155_v17 }
 0x337   : > { %1162 = vrot.lane.b32.xlu1 %v4064_v9, %s3655_s0 }
 0x33b   : > { %1306 = vrot.lane.b32.xlu1 %v4025_v30, %s3656_s26 }
 0x33c   : > { %v1042_v18 = vpop.xlane.xlu0 %1041 }
 0x33d   : > { %3431 = vrcp.f32 %v1042_v18 }
 0x33f   : > { %1304 = vrot.lane.b32.xlu1 %v4027_v33, %s3656_s26 }
 0x340   : > { %v1368_v40 = vpop.permute.xlu0 %1367 }
 0x341   : > { %v1373_v44 = vsel %vm1050_vm4, %v1368_v40, 0 }
 0x34a   : > { %v3432_v23 = vpop.eup %3431 }
 0x34b   : > { %v1044_v24 = vmul.f32 %v3432_v23, %v3428_v3 }
 0x34d   : > { %v1045_v25 = vpack.c.bf16 %v1044_v24, %v1044_v24 }
 0x34f   : > { %3134 = vmatmul.mubr.msk.bf16.vlgmr.msra.gmra.mxu0 %vm986_vm3, %v1045_v25 }
 0x350   : > { %3145 = vmatprep.mubr.msk.bf16.mxu0 %vm3654_vm1, %v3653_v4 }
 0x3af   : > { %v1157_v29 = vpop.xlane.xlu1 %1156 }
 0x3b0   : > { %3433 = vrcp.f32 %v1157_v29 }
 0x3b3   : > { %v1163_v31 = vpop.permute.xlu1 %1162 }
 0x3b4   : > { %v1168_v32 = vsel %vm1050_vm4, %v1163_v31, 0 }
 0x3b5   : > { %3144 = vmatpush3.bf16.msra.mxu0 %v1168_v32 }
 0x3b6   : > { %3155 = vmatprep.subr.bf16.mxu0 %v3653_v4 }
 0x3b7   : > { %v1307_v47 = vpop.permute.xlu1 %1306 }
 0x3b8   : > { %v1312_v51 = vsel %vm986_vm3, %v1307_v47, 0 }
 0x3bb   : > { %v1305_v54 = vpop.permute.xlu1 %1304 }
 0x3bd   : > { %v3434_v36 = vpop.eup %3433 }
 0x3be   : > { %v1159_v37 = vmul.f32 %v3434_v36, %v3430_v16 }
 0x3c0   : > { %v1160_v38 = vpack.c.bf16 %v1159_v37, %v1159_v37 }
 0x3c2   : > { %3146 = vmatmul.mubr.msk.bf16.vlgmr.msra.gmra.mxu0 %vm986_vm3, %v1160_v38 }
 0x3c3   : > { %3156 = vmatpush3.bf16.msra.mxu0 %v1262_v39  ;;  %3157 = vmatprep.mubr.msk.bf16.mxu0 %vm3654_vm1, %v3653_v4 }
 0x3c4   : > { %3167 = vmatprep.subr.bf16.mxu0 %v3653_v4 }
 0x40f   : > { %v1088_v41 = vpop.f32.mrf.mxu0 }
 0x410   : > { %v1094_v42 = vpack.c.bf16 %v1088_v41, %v1088_v41 }
 0x411   : > { %v3135_v43 = vpop.f32.mrf.mxu0 }
 0x412   : > { %3158 = vmatmul.mubr.msk.bf16.vlgmr.msra.gmra.mxu0 %vm986_vm3, %v1094_v42 }
 0x413   : > { %3168 = vmatpush3.bf16.msra.mxu0 %v1373_v44  ;;  %v1091_v45 = vpop.f32.mrf.mxu0  ;;  %3169 = vmatprep.mubr.msk.bf16.mxu0 %vm3654_vm1, %v3653_v4 }
 0x414   : > { %3179 = vmatprep.subr.bf16.mxu0 %v3653_v4 }
 0x415   : > { %v3136_v46 = vpop.f32.mrf.mxu0 }
 0x482   : > { %v1204_v48 = vpop.f32.mrf.mxu0 }
 0x483   : > { %v1210_v49 = vpack.c.bf16 %v1204_v48, %v1204_v48 }
 0x484   : > { %v3147_v50 = vpop.f32.mrf.mxu0 }
 0x485   : > { %3152 = vmatmul.mubr.msk.bf16.vlgmr.msra.gmra.mxu1 %vm986_vm3, %v1210_v49  ;;  %v2970_v49 = vld [vmem:[%s3893_s18 + $0x78] sm:$0xff] }
 0x486   : > { %3162 = vmatpush3.bf16.xpose.msra.mxu1 %v1312_v51  ;;  %v1207_v52 = vpop.f32.mrf.mxu0  ;;  %3163 = vmatprep.mubr.msk.bf16.mxu1 %vm3654_vm1, %v3653_v4  ;;  %v1576_v50 = vpack.c.bf16 %v2970_v49, %v2970_v49 }
 0x487   : > { %3173 = vmatprep.subr.bf16.mxu1 %v3653_v4 }
 0x488   : > { %v3148_v53 = vpop.f32.mrf.mxu0  ;;  %v1581_v52 = vsel %vm1050_vm4, %v1576_v50, 0  ;;  %v4197_v50 = vld [vmem:[%s4526_s4] sm:$0xf] }
 0x48d   : > { %3164 = vmatmul.mubr.msk.bf16.vlgmr.msra.gmra.mxu1 %vm986_vm3, %v1305_v54 }
 0x48e   : > { %3175 = vmatprep.mubr.msk.bf16.mxu1 %vm3654_vm1, %v3653_v4 }
 0x4d2   : > { %v4105_v55 = vpop.f32.mrf.mxu0 }
 0x4d4   : > { %v3159_v56 = vpop.f32.mrf.mxu0 }
 0x4d6   : > { %v1301_v57 = vpop.f32.mrf.mxu0 }
 0x4d8   : > { %v3160_v58 = vpop.f32.mrf.mxu0 }
 0x545   : > { %v1252_v59 = vpop.f32.mrf.mxu1 }
 0x546   : > { %v1299_v45 = vadd.f32 %v4105_v55, %v1252_v59 }
 0x547   : > { %v3153_v60 = vpop.f32.mrf.mxu1 }
 0x549   : > { %v1255_v61 = vpop.f32.mrf.mxu1 }
 0x54b   : > { %v3154_v62 = vpop.f32.mrf.mxu1 }
 0x54d   : > { %v1348_v63 = vpop.f32.mrf.mxu1 }
 0x54e   : > { %v1354_v0 = vmul.f32 0.35355338, %v1348_v63 }
 0x54f   : > { %v3165_v1 = vpop.f32.mrf.mxu1 }
 0x550   : > { %v1355_v2 = vsel %vm986_vm3, %v1354_v0, -inf }
 0x551   : > { %1356 = vmax.xlane.f32.xlu1 %v1355_v2  ;;  %v1351_v3 = vpop.f32.mrf.mxu1 }
 0x553   : > { %v3166_v5 = vpop.f32.mrf.mxu1 }
 0x5da   : > { %v1357_v7 = vpop.xlane.xlu1 %1356 }
 0x5db   : > { %v1358_v8 = vsub.f32 %v1354_v0, %v1357_v7  ;;  %v1626_v0 = vsub.s32 3, %v4006_v19 }
 0x5dd   : > { %v1359_v10 = vmul.f32 1.442695, %v1358_v8  ;;  %v1627_v1 = vrot.slane %v4016_v21, %v1626_v0 }
 0x5df   : > { %3435 = vpow2.f32 %v1359_v10 }
 0x5ec   : > { %v3436_v11 = vpop.eup %3435 }
 0x5ed   : > { %v1361_v13 = vsel %vm986_vm3, %v3436_v11, 0.0 }
 0x5ee   : > { %1362 = vadd.xlane.f32.xlu0 %v1361_v13 }
 0x604   : > { %1466 = vrot.lane.b32.xlu0 %v4025_v30, %s3657_s12 }
 0x608   : > { %1464 = vrot.lane.b32.xlu0 %v4027_v33, %s3657_s12  ;;  %v2969_v33 = vld [vmem:[%s3893_s18 + $0x70] sm:$0xff]  ;;  %s4521_s18 = sld [smem:[#allocation28_spill]] }
 0x609   : > { %v1416_v25 = vpack.c.bf16 %v2969_v33, %v2969_v33  ;;  %v2985_v33 = vld [vmem:[%s3899_s10 + $0x28] sm:$0xff] }
 0x60b   : > { %v1421_v26 = vsel %vm1050_vm4, %v1416_v25, 0 }
 0x60c   : > { %3174 = vmatpush3.bf16.msra.mxu1 %v1421_v26 }
 0x60d   : > { %3185 = vmatprep.subr.bf16.mxu1 %v3653_v4 }
 0x60e   : > { %v1656_v26 = vld [vmem:[%s4521_s18] sm:$0xff] }
 0x677   : > { %v1363_v15 = vpop.xlane.xlu0 %1362 }
 0x678   : > { %3437 = vrcp.f32 %v1363_v15 }
 0x67b   : > { %v1467_v18 = vpop.permute.xlu0 %1466 }
 0x67c   : > { %v1472_v24 = vsel %vm986_vm3, %v1467_v18, 0 }
 0x67f   : > { %v1465_v30 = vpop.permute.xlu0 %1464 }
 0x685   : > { %v3438_v16 = vpop.eup %3437 }
 0x686   : > { %v1365_v17 = vmul.f32 %v3438_v16, %v3436_v11 }
 0x688   : > { %v1366_v23 = vpack.c.bf16 %v1365_v17, %v1365_v17 }
 0x68a   : > { %3170 = vmatmul.mubr.msk.bf16.vlgmr.msra.gmra.mxu0 %vm986_vm3, %v1366_v23  ;;  %v2986_v23 = vld [vmem:[%s3899_s10 + $0x30] sm:$0xff] }
 0x68b   : > { %3180 = vmatpush3.bf16.xpose.msra.mxu0 %v1472_v24  ;;  %3181 = vmatprep.mubr.msk.bf16.mxu0 %vm3654_vm1, %v3653_v4  ;;  %v2987_v24 = vld [vmem:[%s3899_s10 + $0x38] sm:$0xff] }
 0x68c   : > { %3191 = vmatprep.subr.bf16.mxu0 %v3653_v4 }
 0x692   : > { %3182 = vmatmul.mubr.msk.bf16.vlgmr.msra.gmra.mxu0 %vm986_vm3, %v1465_v30  ;;  %v2984_v30 = vld [vmem:[%s3899_s10 + $0x20] sm:$0xff] }
 0x693   : > { %3193 = vmatprep.mubr.msk.bf16.mxu0 %vm3654_vm1, %v3653_v4  ;;  %3192 = vmatpush3.bf16.msra.mxu0 %v1581_v52  ;;  %v1720_v25 = vpack.c.bf16 %v2985_v33, %v2984_v30 }
 0x694   : > { %3205 = vmatprep.subr.bf16.mxu0 %v3653_v4 }
 0x74a   : > { %v1409_v27 = vpop.f32.mrf.mxu0 }
 0x74b   : > { %v1415_v28 = vpack.c.bf16 %v1409_v27, %v1409_v27  ;;  %v1657_v27 = vld [vmem:[%s4521_s18 + $0x8] sm:$0xff] }
 0x74c   : > { %v3171_v29 = vpop.f32.mrf.mxu0 }
 0x74d   : > { %3176 = vmatmul.mubr.msk.bf16.vlgmr.msra.gmra.mxu1 %vm986_vm3, %v1415_v28  ;;  %v1719_v28 = vpack.c.bf16 %v1657_v27, %v1656_v26  ;;  %v1662_v29 = vld [vmem:[%s3899_s10 + $0x10] sm:$0xff] }
 0x74e   : > { %v1412_v31 = vpop.f32.mrf.mxu0  ;;  %3187 = vmatprep.mubr.msk.bf16.mxu1 %vm3654_vm1, %v3653_v4 }
 0x74f   : > { %v1663_v31 = vld [vmem:[%s3899_s10 + $0x18] sm:$0xff] }
 0x750   : > { %v3172_v32 = vpop.f32.mrf.mxu0 }
 0x751   : > { %v1660_v32 = vld [vmem:[%s3899_s10] sm:$0xff] }
 0x752   : > { %v1508_v34 = vpop.f32.mrf.mxu0 }
 0x753   : > { %v1514_v35 = vmul.f32 0.35355338, %v1508_v34  ;;  %v1666_v34 = vpack.c.bf16 %v1663_v31, %v1662_v29 }
 0x754   : > { %v3183_v36 = vpop.f32.mrf.mxu0 }
 0x755   : > { %v1515_v37 = vsel %vm986_vm3, %v1514_v35, -inf }
 0x756   : > { %1516 = vmax.xlane.f32.xlu0 %v1515_v37  ;;  %v1511_v38 = vpop.f32.mrf.mxu0 }
 0x758   : > { %v3184_v39 = vpop.f32.mrf.mxu0 }
 0x7df   : > { %v1517_v40 = vpop.xlane.xlu0 %1516 }
 0x7e0   : > { %v1518_v41 = vsub.f32 %v1514_v35, %v1517_v40  ;;  %v1661_v35 = vld [vmem:[%s3899_s10 + $0x8] sm:$0xff]  ;;  %v4172_v40 = vld [vmem:[%s4523_s6] sm:$0x7]  ;;  %s2683_s6 = sshll.u32 %s753_s2, 4  ;;  %s2684_s6 = int_to_ptr.vmem [resolvable:$true] %s2683_s6 }
 0x7e1   : > { %v1665_v36 = vpack.c.bf16 %v1661_v35, %v1660_v32  ;;  %v1781_v35 = vrot.slane %v4197_v50, %v4060_v6  ;;  %s3523_s4 = scalar_lea.vmem %s2684_s6, 128 }
 0x7e2   : > { %v1519_v42 = vmul.f32 1.442695, %v1518_v41  ;;  %v4179_v41 = vld [vmem:[%s787_s3] sm:$0x7]  ;;  %s4536_s3 = smov %s4535_s27  ;;  %p3524_p1 = scmp.ne.s32.totalorder %s2684_s6, %s3523_s4 }
 0x7e4   : > { %3439 = vpow2.f32 %v1519_v42  ;;  %v1647_v42 = vrot.slane %v4172_v40, %v4019_v22  ;;  %p3525_p7 = pnand %p3524_p1, %p3834_p13 }
 0x7e6   : > { %p3526_p9 = pneg %p3525_p7 }
 0x7f1   : > { %v3440_v43 = vpop.eup %3439 }
 0x7f2   : > { %v1521_v44 = vsel %vm986_vm3, %v3440_v43, 0.0 }
 0x7f3   : > { %1522 = vadd.xlane.f32.xlu1 %v1521_v44 }
 0x804   : > { %1527 = vrot.lane.b32.xlu1 %v4064_v9, %s3657_s12 }
 0x80d   : > { %v1457_v46 = vpop.f32.mrf.mxu1 }
 0x80e   : > { %v1463_v47 = vadd.f32 %v1457_v46, %v1299_v45  ;;  %v1652_v45 = vrot.slane %v4179_v41, %v4019_v22 }
 0x80f   : > { %v3177_v48 = vpop.f32.mrf.mxu1 }
 0x811   : > { %v1460_v51 = vpop.f32.mrf.mxu1 }
 0x812   : > { %v1725_v51 = vrot.slane %v4197_v50, %v4009_v20 }
 0x813   : > { %v3178_v53 = vpop.f32.mrf.mxu1 }
 0x87c   : > { %v1523_v54 = vpop.xlane.xlu1 %1522 }
 0x87d   : > { %3441 = vrcp.f32 %v1523_v54 }
 0x880   : > { %v1528_v56 = vpop.permute.xlu1 %1527 }
 0x881   : > { %v1533_v57 = vsel %vm1050_vm4, %v1528_v56, 0 }
 0x882   : > { %3186 = vmatpush3.bf16.msra.mxu1 %v1533_v57 }
 0x883   : > { %3197 = vmatprep.subr.bf16.mxu1 %v3653_v4 }
 0x88a   : > { %v3442_v9 = vpop.eup %3441 }
 0x88b   : > { %v1525_v55 = vmul.f32 %v3442_v9, %v3440_v43 }
 0x88d   : > { %v1526_v58 = vpack.c.bf16 %v1525_v55, %v1525_v55 }
 0x88f   : > { %3188 = vmatmul.mubr.msk.bf16.vlgmr.msra.gmra.mxu1 %vm986_vm3, %v1526_v58  ;;  %v1670_v58 = vrot.slane %v4197_v50, %v4019_v22 }
 0x890   : > { %3201 = vmatprep.mubr.msk.bf16.mxu1 %vm3654_vm1, %v3653_v4  ;;  %3198 = vmatpush3.bf16.msra.mxu1 %v1666_v34 }
 0x891   : > { %3199 = vmatprep.subr.bf16.mxu1 %v3653_v4 }
 0x894   : > { %3200 = vmatpush3.bf16.msra.mxu1 %v1665_v36 }
 0x895   : > { %3213 = vmatprep.subr.bf16.mxu1 %v3653_v4 }
 0x94f   : > { %v1569_v59 = vpop.f32.mrf.mxu1 }
 0x950   : > { %v1575_v60 = vpack.c.bf16 %v1569_v59, %v1569_v59 }
 0x951   : > { %v3189_v61 = vpop.f32.mrf.mxu1 }
 0x952   : > { %3194 = vmatmul.mubr.msk.bf16.vlgmr.msra.gmra.mxu0 %vm986_vm3, %v1575_v60 }
 0x953   : > { %v1572_v62 = vpop.f32.mrf.mxu1  ;;  %3209 = vmatprep.mubr.msk.bf16.mxu0 %vm3654_vm1, %v3653_v4 }
 0x955   : > { %v3190_v63 = vpop.f32.mrf.mxu1 }
 0xa12   : > { %v1617_v2 = vpop.f32.mrf.mxu0 }
 0xa13   : > { %v1623_v3 = vadd.f32 %v1617_v2, %v1463_v47 }
 0xa14   : > { %v3195_v5 = vpop.f32.mrf.mxu0 }
 0xa15   : > { %v1628_v7 = vadd.f32 %v1627_v1, %v1623_v3  ;;  %v2991_v3 = vld [vmem:[%s3899_s10 + $0x50] sm:$0xff]  ;;  %v2992_v5 = vld [vmem:[%s3899_s10 + $0x58] sm:$0xff] }
 0xa16   : > { %v1620_v8 = vpop.f32.mrf.mxu0 }
 0xa17   : > { %v1629_v10 = vadd.f32 %v1628_v7, %v3987_v12  ;;  %v1721_v12 = vpack.c.bf16 %v2987_v24, %v2986_v23  ;;  %v2989_v7 = vld [vmem:[%s3899_s10 + $0x40] sm:$0xff]  ;;  %v1777_v8 = vpack.c.bf16 %v2992_v5, %v2991_v3 }
 0xa18   : > { %v3196_v11 = vpop.f32.mrf.mxu0 }
 0xa19   : > { %v1630_v13 = vsel %vm829_vm2, %v1629_v10, 0.0  ;;  %3206 = vmatpush3.bf16.msra.mxu0 %v1721_v12 }
 0xa1a   : > { %1631 = vadd.xlane.f32.xlu1 %v1630_v13  ;;  %3207 = vmatprep.subr.bf16.mxu0 %v3653_v4  ;;  %v1654_v13 = vld [vmem:[%s4527_s16] sm:$0xff] }
 0xa1d   : > { %3208 = vmatpush3.bf16.msra.mxu0 %v1720_v25 }
 0xa1e   : > { %3221 = vmatprep.subr.bf16.mxu0 %v3653_v4 }
 0xa20   : > { %3210 = vmatmul.mubr.msk.bf16.vlgmr.msra.gmra.mxu0 %vm829_vm2, %v1719_v28 }
 0xa21   : > { %3223 = vmatprep.mubr.msk.bf16.mxu0 %vm3654_vm1, %v3653_v4 }
 0xaa3   : > { %v1632_v15 = vpop.xlane.xlu1 %1631 }
 0xaa4   : > { %v1634_v16 = vmul.f32 0.03125, %v1632_v15  ;;  %v1655_v15 = vld [vmem:[%s4527_s16 + $0x8] sm:$0xff]  ;;  %s3658_s16 = smov [#allocation8]  }
 0xaa6   : > { %v1635_v21 = vsub.f32 %v1629_v10, %v1634_v16  ;;  %v2990_v10 = vld [vmem:[%s3899_s10 + $0x48] sm:$0xff]  ;;  %v1775_v16 = vpack.c.bf16 %v1655_v15, %v1654_v13 }
 0xaa7   : > { %v1776_v11 = vpack.c.bf16 %v2990_v10, %v2989_v7 }
 0xaa8   : > { %v1636_v17 = vmul.f32 %v1635_v21, %v1635_v21 }
 0xaaa   : > { %v1637_v18 = vsel %vm829_vm2, %v1636_v17, 0.0 }
 0xaab   : > { %1638 = vadd.xlane.f32.xlu0 %v1637_v18 }
 0xae0   : > { %v1763_v52 = vpop.f32.mrf.mxu0 }
 0xae1   : > { %v1764_v54 = vadd.f32 %v1763_v52, %v1725_v51 }
 0xae2   : > { %v3211_v53 = vpop.f32.mrf.mxu0 }
 0xae4   : > { %v1766_v56 = vpop.f32.mrf.mxu0 }
 0xae6   : > { %v3212_v57 = vpop.f32.mrf.mxu0 }
 0xb34   : > { %v1639_v37 = vpop.xlane.xlu0 %1638 }
 0xb35   : > { %v1640_v38 = vmul.f32 0.03125, %v1639_v37 }
 0xb37   : > { %v1641_v39 = vadd.f32 1e-05, %v1640_v38 }
 0xb39   : > { %3443 = vrsqrt.f32 %v1641_v39 }
 0xb46   : > { %v3444_v43 = vpop.eup %3443 }
 0xb47   : > { %v1643_v44 = vmul.f32 %v3444_v43, %v1635_v21 }
 0xb49   : > { %v1648_v46 = vmul.f32 %v1647_v42, %v1643_v44 }
 0xb4b   : > { %v4185_v47 = vadd.f32 %v1652_v45, %v1648_v46 }
 0xb4d   : > { %v1658_v48 = vadd.f32 %v4185_v47, %v3992_v14  ;;  %v1767_v14 = vadd.f32 %v1766_v56, %v1725_v51 }
 0xb4f   : > { %v1664_v49 = vpack.c.bf16 %v1658_v48, %v1658_v48  ;;  %v4201_v9 = vpack.c.bf16 %v1767_v14, %v1764_v54 }
 0xb51   : > { %3202 = vmatmul.mubr.msk.bf16.vlgmr.msra.gmra.mxu1 %vm829_vm2, %v1664_v49  ;;  %1943 = vrot.lane.b32.xlu0 %v4201_v9, %s3655_s0  ;;  %v1837_v55 = vsel %vm986_vm3, %v4201_v9, 0 }
 0xb52   : > { %3217 = vmatprep.mubr.msk.bf16.mxu1 %vm3654_vm1, %v3653_v4  ;;  %3222 = vmatpush3.bf16.xpose.msra.mxu0 %v1837_v55  ;;  %v2995_v55 = vld [vmem:[%s3899_s10 + $0x68] sm:$0xff] }
 0xb53   : > { %3233 = vmatprep.subr.bf16.mxu0 %v3653_v4  ;;  %3214 = vmatpush3.bf16.msra.mxu1 %v1777_v8 }
 0xb54   : > { %3215 = vmatprep.subr.bf16.mxu1 %v3653_v4 }
 0xb57   : > { %3216 = vmatpush3.bf16.msra.mxu1 %v1776_v11 }
 0xb58   : > { %3227 = vmatprep.subr.bf16.mxu1 %v3653_v4 }
 0xb5a   : > { %3218 = vmatmul.mubr.msk.bf16.vlgmr.msra.gmra.mxu1 %vm829_vm2, %v1775_v16 }
 0xb5b   : > { %3229 = vmatprep.mubr.msk.bf16.mxu1 %vm3654_vm1, %v3653_v4 }
 0xbc3   : > { %v1944_v60 = vpop.permute.xlu0 %1943 }
 0xbc4   : > { %v1949_v1 = vsel %vm986_vm3, %v1944_v60, 0 }
 0xc11   : > { %v1708_v59 = vpop.f32.mrf.mxu1 }
 0xc12   : > { %v1709_v61 = vadd.f32 %v1708_v59, %v1670_v58  ;;  %v2052_v58 = vpack.c.bf16 %v2995_v55, %v2995_v55 }
 0xc13   : > { %v3203_v62 = vpop.f32.mrf.mxu1 }
 0xc14   : > { %v4210_v63 = vpack.c.bf16 %v1709_v61, %v1709_v61  ;;  %v2057_v59 = vsel %vm1050_vm4, %v2052_v58, 0  ;;  %v2994_v62 = vld [vmem:[%s3899_s10 + $0x60] sm:$0xff] }
 0xc15   : > { %v1711_v2 = vpop.f32.mrf.mxu1 }
 0xc16   : > { %1940 = vrot.lane.b32.xlu0 %v4210_v63, %s3655_s0  ;;  %3224 = vmatmul.mubr.msk.bf16.vlgmr.msra.gmra.mxu0 %vm986_vm3, %v4210_v63 }
 0xc17   : > { %v3204_v22 = vpop.f32.mrf.mxu1  ;;  %3234 = vmatpush3.bf16.xpose.msra.mxu0 %v1949_v1  ;;  %3235 = vmatprep.mubr.msk.bf16.mxu0 %vm3654_vm1, %v3653_v4  ;;  %v1938_v1 = vpack.c.bf16 %v2994_v62, %v2994_v62 }
 0xc18   : > { %3245 = vmatprep.subr.bf16.mxu0 %v3653_v4 }
 0xc19   : > { %v2103_v5 = vsel %vm1050_vm4, %v1938_v1, 0 }
 0xc1a   : > { %v1819_v36 = vpop.f32.mrf.mxu1 }
 0xc1b   : > { %v1820_v38 = vadd.f32 %v1819_v36, %v1781_v35 }
 0xc1c   : > { %v3219_v37 = vpop.f32.mrf.mxu1 }
 0xc1e   : > { %v1822_v39 = vpop.f32.mrf.mxu1 }
 0xc1f   : > { %v1823_v42 = vadd.f32 %v1822_v39, %v1781_v35 }
 0xc20   : > { %v3220_v43 = vpop.f32.mrf.mxu1 }
 0xc21   : > { %v4238_v44 = vpack.c.bf16 %v1823_v42, %v1820_v38 }
 0xc23   : > { %3228 = vmatpush3.bf16.msra.mxu1 %v4238_v44 }
 0xc24   : > { %3239 = vmatprep.subr.bf16.mxu1 %v3653_v4 }
 0xc88   : > { %v1941_v21 = vpop.permute.xlu0 %1940 }
 0xc89   : > { %3236 = vmatmul.mubr.msk.bf16.vlgmr.msra.gmra.mxu0 %vm986_vm3, %v1941_v21 }
 0xc8a   : > { %3247 = vmatprep.mubr.msk.bf16.mxu0 %vm3654_vm1, %v3653_v4  ;;  %3246 = vmatpush3.bf16.msra.mxu0 %v2057_v59 }
 0xc8b   : > { %3257 = vmatprep.subr.bf16.mxu0 %v3653_v4 }
 0xcd6   : > { %v1873_v17 = vpop.f32.mrf.mxu0 }
 0xcd7   : > { %v1879_v18 = vmul.f32 0.35355338, %v1873_v17 }
 0xcd8   : > { %v3225_v23 = vpop.f32.mrf.mxu0 }
 0xcd9   : > { %v1881_v24 = vsel %vm1880_vm5, %v1879_v18, -inf }
 0xcda   : > { %1882 = vmax.xlane.f32.xlu1 %v1881_v24  ;;  %v1876_v12 = vpop.f32.mrf.mxu0 }
 0xcdc   : > { %v3226_v30 = vpop.f32.mrf.mxu0 }
 0xd49   : > { %v1985_v33 = vpop.f32.mrf.mxu0 }
 0xd4a   : > { %v1991_v25 = vmul.f32 0.35355338, %v1985_v33 }
 0xd4b   : > { %v3237_v26 = vpop.f32.mrf.mxu0 }
 0xd4c   : > { %v1992_v27 = vsel %vm1880_vm5, %v1991_v25, -inf }
 0xd4d   : > { %1993 = vmax.xlane.f32.xlu0 %v1992_v27  ;;  %v1988_v28 = vpop.f32.mrf.mxu0 }
 0xd4f   : > { %v3238_v29 = vpop.f32.mrf.mxu0 }
 0xd63   : > { %v1883_v31 = vpop.xlane.xlu1 %1882 }
 0xd64   : > { %v1884_v32 = vsub.f32 %v1879_v18, %v1883_v31 }
 0xd66   : > { %v1885_v34 = vmul.f32 1.442695, %v1884_v32 }
 0xd68   : > { %3445 = vpow2.f32 %v1885_v34 }
 0xd75   : > { %v3446_v45 = vpop.eup %3445 }
 0xd76   : > { %v1887_v46 = vsel %vm1880_vm5, %v3446_v45, 0.0 }
 0xd77   : > { %1888 = vadd.xlane.f32.xlu1 %v1887_v46 }
 0xdd6   : > { %v1994_v48 = vpop.xlane.xlu0 %1993 }
 0xdd7   : > { %v1995_v49 = vsub.f32 %v1991_v25, %v1994_v48 }
 0xdd9   : > { %v1996_v51 = vmul.f32 1.442695, %v1995_v49 }
 0xddb   : > { %3447 = vpow2.f32 %v1996_v51 }
 0xde8   : > { %v3448_v52 = vpop.eup %3447 }
 0xde9   : > { %v1998_v53 = vsel %vm1880_vm5, %v3448_v52, 0.0 }
 0xdea   : > { %1999 = vadd.xlane.f32.xlu1 %v1998_v53 }
 0xdfb   : > { %2005 = vrot.lane.b32.xlu1 %v4238_v44, %s3655_s0 }
 0xdff   : > { %2147 = vrot.lane.b32.xlu1 %v4201_v9, %s3656_s26 }
 0xe00   : > { %v1889_v54 = vpop.xlane.xlu1 %1888 }
 0xe01   : > { %3449 = vrcp.f32 %v1889_v54 }
 0xe03   : > { %2145 = vrot.lane.b32.xlu1 %v4210_v63, %s3656_s26 }
 0xe0e   : > { %v3450_v56 = vpop.eup %3449 }
 0xe0f   : > { %v1891_v14 = vmul.f32 %v3450_v56, %v3446_v45  ;;  %v2996_v56 = vld [vmem:[%s3899_s10 + $0x70] sm:$0xff] }
 0xe11   : > { %v1892_v57 = vpack.c.bf16 %v1891_v14, %v1891_v14  ;;  %v2255_v14 = vpack.c.bf16 %v2996_v56, %v2996_v56  ;;  %v2555_v56 = vld [vmem:[%s3971_s8 + $0x38] sm:$0xff] }
 0xe13   : > { %3230 = vmatmul.mubr.msk.bf16.vlgmr.msra.gmra.mxu1 %vm1880_vm5, %v1892_v57  ;;  %v2260_v57 = vsel %vm1050_vm4, %v2255_v14, 0  ;;  %v2552_v14 = vld [vmem:[%s3971_s8 + $0x20] sm:$0xff] }
 0xe14   : > { %3241 = vmatprep.mubr.msk.bf16.mxu1 %vm3654_vm1, %v3653_v4 }
 0xe73   : > { %v2000_v60 = vpop.xlane.xlu1 %1999 }
 0xe74   : > { %3451 = vrcp.f32 %v2000_v60 }
 0xe77   : > { %v2006_v61 = vpop.permute.xlu1 %2005 }
 0xe78   : > { %3240 = vmatpush3.bf16.msra.mxu1 %v2006_v61 }
 0xe79   : > { %3251 = vmatprep.subr.bf16.mxu1 %v3653_v4 }
 0xe7b   : > { %v2148_v15 = vpop.permute.xlu1 %2147 }
 0xe7c   : > { %v2153_v18 = vsel %vm986_vm3, %v2148_v15, 0 }
 0xe7f   : > { %v2146_v12 = vpop.permute.xlu1 %2145 }
 0xe81   : > { %v3452_v2 = vpop.eup %3451 }
 0xe82   : > { %v2002_v22 = vmul.f32 %v3452_v2, %v3448_v52 }
 0xe84   : > { %v2003_v3 = vpack.c.bf16 %v2002_v22, %v2002_v22 }
 0xe86   : > { %3242 = vmatmul.mubr.msk.bf16.vlgmr.msra.gmra.mxu1 %vm1880_vm5, %v2003_v3 }
 0xe87   : > { %3252 = vmatpush3.bf16.msra.mxu1 %v2103_v5  ;;  %3253 = vmatprep.mubr.msk.bf16.mxu1 %vm3654_vm1, %v3653_v4 }
 0xe88   : > { %3263 = vmatprep.subr.bf16.mxu1 %v3653_v4 }
 0xed3   : > { %v1931_v7 = vpop.f32.mrf.mxu1 }
 0xed4   : > { %v1937_v8 = vpack.c.bf16 %v1931_v7, %v1931_v7 }
 0xed5   : > { %v3231_v10 = vpop.f32.mrf.mxu1 }
 0xed6   : > { %3254 = vmatmul.mubr.msk.bf16.vlgmr.msra.gmra.mxu1 %vm986_vm3, %v1937_v8 }
 0xed7   : > { %v1934_v11 = vpop.f32.mrf.mxu1  ;;  %3265 = vmatprep.mubr.msk.bf16.mxu1 %vm3654_vm1, %v3653_v4 }
 0xed9   : > { %v3232_v13 = vpop.f32.mrf.mxu1 }
 0xf46   : > { %v2045_v16 = vpop.f32.mrf.mxu1 }
 0xf47   : > { %v2051_v21 = vpack.c.bf16 %v2045_v16, %v2045_v16 }
 0xf48   : > { %v3243_v17 = vpop.f32.mrf.mxu1 }
 0xf49   : > { %3248 = vmatmul.mubr.msk.bf16.vlgmr.msra.gmra.mxu0 %vm986_vm3, %v2051_v21 }
 0xf4a   : > { %3258 = vmatpush3.bf16.xpose.msra.mxu0 %v2153_v18  ;;  %v2048_v23 = vpop.f32.mrf.mxu1  ;;  %3259 = vmatprep.mubr.msk.bf16.mxu0 %vm3654_vm1, %v3653_v4  ;;  %v2997_v18 = vld [vmem:[%s3899_s10 + $0x78] sm:$0xff] }
 0xf4b   : > { %3269 = vmatprep.subr.bf16.mxu0 %v3653_v4  ;;  %v2413_v23 = vpack.c.bf16 %v2997_v18, %v2997_v18 }
 0xf4c   : > { %v3244_v24 = vpop.f32.mrf.mxu1 }
 0xf51   : > { %3260 = vmatmul.mubr.msk.bf16.vlgmr.msra.gmra.mxu0 %vm986_vm3, %v2146_v12  ;;  %v2418_v12 = vsel %vm1050_vm4, %v2413_v23, 0 }
 0xf52   : > { %3271 = vmatprep.mubr.msk.bf16.mxu0 %vm3654_vm1, %v3653_v4  ;;  %3270 = vmatpush3.bf16.msra.mxu0 %v2260_v57 }
 0xf53   : > { %3281 = vmatprep.subr.bf16.mxu0 %v3653_v4 }
 0xf96   : > { %v4274_v30 = vpop.f32.mrf.mxu1 }
 0xf98   : > { %v3255_v33 = vpop.f32.mrf.mxu1 }
 0xf9a   : > { %v2142_v25 = vpop.f32.mrf.mxu1 }
 0xf9c   : > { %v3256_v26 = vpop.f32.mrf.mxu1 }
0x1009   : > { %v4276_v27 = vpop.f32.mrf.mxu0 }
0x100a   : > { %v2140_v15 = vadd.f32 %v4274_v30, %v4276_v27 }
0x100b   : > { %v3249_v28 = vpop.f32.mrf.mxu0 }
0x100d   : > { %v2096_v29 = vpop.f32.mrf.mxu0 }
0x100f   : > { %v3250_v31 = vpop.f32.mrf.mxu0 }
0x1011   : > { %v2189_v32 = vpop.f32.mrf.mxu0 }
0x1012   : > { %v2195_v34 = vmul.f32 0.35355338, %v2189_v32 }
0x1013   : > { %v3261_v35 = vpop.f32.mrf.mxu0 }
0x1014   : > { %v2196_v36 = vsel %vm1880_vm5, %v2195_v34, -inf  ;;  %v2464_v35 = vrot.slane %v4197_v50, %v1626_v0 }
0x1015   : > { %2197 = vmax.xlane.f32.xlu0 %v2196_v36  ;;  %v2192_v37 = vpop.f32.mrf.mxu0 }
0x1017   : > { %v3262_v38 = vpop.f32.mrf.mxu0 }
0x102b   : > { %2208 = vrot.lane.b32.xlu0 %v4238_v44, %s3656_s26 }
0x102f   : > { %2305 = vrot.lane.b32.xlu0 %v4201_v9, %s3657_s12 }
0x1033   : > { %2303 = vrot.lane.b32.xlu0 %v4210_v63, %s3657_s12 }
0x109e   : > { %v2198_v39 = vpop.xlane.xlu0 %2197 }
0x109f   : > { %v2199_v42 = vsub.f32 %v2195_v34, %v2198_v39 }
0x10a1   : > { %v2200_v43 = vmul.f32 1.442695, %v2199_v42 }
0x10a2   : > { %v2209_v45 = vpop.permute.xlu0 %2208 }
0x10a3   : > { %3453 = vpow2.f32 %v2200_v43  ;;  %3264 = vmatpush3.bf16.msra.mxu1 %v2209_v45 }
0x10a4   : > { %3275 = vmatprep.subr.bf16.mxu1 %v3653_v4 }
0x10a6   : > { %v2306_v52 = vpop.permute.xlu0 %2305 }
0x10a7   : > { %v2311_v63 = vsel %vm986_vm3, %v2306_v52, 0 }
0x10aa   : > { %v2304_v54 = vpop.permute.xlu0 %2303 }
0x10b0   : > { %v3454_v46 = vpop.eup %3453 }
0x10b1   : > { %v2202_v48 = vsel %vm1880_vm5, %v3454_v46, 0.0 }
0x10b2   : > { %2203 = vadd.xlane.f32.xlu1 %v2202_v48 }
0x113b   : > { %v2204_v49 = vpop.xlane.xlu1 %2203 }
0x113c   : > { %3455 = vrcp.f32 %v2204_v49 }
0x1149   : > { %v3456_v51 = vpop.eup %3455 }
0x114a   : > { %v2206_v9 = vmul.f32 %v3456_v51, %v3454_v46  ;;  %v2492_v51 = vld [vmem:[%s3957_s28 + $0x10] sm:$0xff] }
0x114c   : > { %v2207_v53 = vpack.c.bf16 %v2206_v9, %v2206_v9  ;;  %v2493_v9 = vld [vmem:[%s3957_s28 + $0x18] sm:$0xff] }
0x114d   : > { %v2496_v52 = vpack.c.bf16 %v2493_v9, %v2492_v51 }
0x114e   : > { %3266 = vmatmul.mubr.msk.bf16.vlgmr.msra.gmra.mxu1 %vm1880_vm5, %v2207_v53  ;;  %v2490_v53 = vld [vmem:[%s3957_s28] sm:$0xff] }
0x114f   : > { %3276 = vmatpush3.bf16.xpose.msra.mxu1 %v2311_v63  ;;  %3277 = vmatprep.mubr.msk.bf16.mxu1 %vm3654_vm1, %v3653_v4 }
0x1150   : > { %3287 = vmatprep.subr.bf16.mxu1 %v3653_v4 }
0x1156   : > { %3278 = vmatmul.mubr.msk.bf16.vlgmr.msra.gmra.mxu1 %vm986_vm3, %v2304_v54  ;;  %v2554_v54 = vld [vmem:[%s3971_s8 + $0x30] sm:$0xff] }
0x1157   : > { %3289 = vmatprep.mubr.msk.bf16.mxu1 %vm3654_vm1, %v3653_v4  ;;  %3288 = vmatpush3.bf16.msra.mxu1 %v2418_v12  ;;  %v2560_v57 = vpack.c.bf16 %v2555_v56, %v2554_v54  ;;  %v3015_v54 = vld [vmem:[%s4534_s23] ss:$0 sm:$0xff] }
0x1158   : > { %3301 = vmatprep.subr.bf16.mxu1 %v3653_v4 }
0x120e   : > { %v2248_v55 = vpop.f32.mrf.mxu1 }
0x120f   : > { %v2254_v58 = vpack.c.bf16 %v2248_v55, %v2248_v55  ;;  %v2553_v55 = vld [vmem:[%s3971_s8 + $0x28] sm:$0xff] }
0x1210   : > { %v3267_v59 = vpop.f32.mrf.mxu1 }
0x1211   : > { %3272 = vmatmul.mubr.msk.bf16.vlgmr.msra.gmra.mxu0 %vm986_vm3, %v2254_v58  ;;  %v2559_v58 = vpack.c.bf16 %v2553_v55, %v2552_v14 }
0x1212   : > { %v2251_v60 = vpop.f32.mrf.mxu1  ;;  %3283 = vmatprep.mubr.msk.bf16.mxu0 %vm3654_vm1, %v3653_v4 }
0x1214   : > { %v3268_v61 = vpop.f32.mrf.mxu1 }
0x1216   : > { %v2347_v62 = vpop.f32.mrf.mxu1 }
0x1217   : > { %v2353_v1 = vmul.f32 0.35355338, %v2347_v62  ;;  %v2483_v62 = vrot.slane %v4172_v40, %v4009_v20 }
0x1218   : > { %v3279_v2 = vpop.f32.mrf.mxu1 }
0x1219   : > { %v2354_v22 = vsel %vm1880_vm5, %v2353_v1, -inf }
0x121a   : > { %2355 = vmax.xlane.f32.xlu0 %v2354_v22  ;;  %v2350_v3 = vpop.f32.mrf.mxu1  ;;  %v2488_v22 = vrot.slane %v4179_v41, %v4009_v20  ;;  %v3010_v20 = vld [vmem:[%s795_s14] ss:$0 sm:$0xff] }
0x121c   : > { %v3280_v5 = vpop.f32.mrf.mxu1 }
0x12a3   : > { %v2356_v7 = vpop.xlane.xlu0 %2355 }
0x12a4   : > { %v2357_v8 = vsub.f32 %v2353_v1, %v2356_v7 }
0x12a6   : > { %v2358_v10 = vmul.f32 1.442695, %v2357_v8  ;;  %v2550_v8 = vld [vmem:[%s3971_s8 + $0x10] sm:$0xff] }
0x12a8   : > { %3457 = vpow2.f32 %v2358_v10  ;;  %v2551_v10 = vld [vmem:[%s3971_s8 + $0x18] sm:$0xff] }
0x12b5   : > { %v3458_v11 = vpop.eup %3457 }
0x12b6   : > { %v2360_v13 = vsel %vm1880_vm5, %v3458_v11, 0.0 }
0x12b7   : > { %2361 = vadd.xlane.f32.xlu1 %v2360_v13  ;;  %v2548_v13 = vld [vmem:[%s3971_s8] sm:$0xff] }
0x12c8   : > { %2366 = vrot.lane.b32.xlu1 %v4238_v44, %s3657_s12  ;;  %s4533_s12 = sld [smem:[#allocation42_spill]] }
0x12d1   : > { %v2296_v16 = vpop.f32.mrf.mxu0 }
0x12d2   : > { %v2302_v21 = vadd.f32 %v2296_v16, %v2140_v15  ;;  %v2549_v15 = vld [vmem:[%s3971_s8 + $0x8] sm:$0xff]  ;;  %s4531_s8 = sld [smem:[#allocation13_spill]] }
0x12d3   : > { %v3273_v17 = vpop.f32.mrf.mxu0  ;;  %v2557_v16 = vpack.c.bf16 %v2549_v15, %v2548_v13 }
0x12d5   : > { %v2299_v24 = vpop.f32.mrf.mxu0 }
0x12d7   : > { %v3274_v33 = vpop.f32.mrf.mxu0 }
0x12d8   : > { %s4537_s13 = sand.u32 1, %s4531_s8  }
0x12d9   : > { %s2668_s20 = scalar_lea.sflag [#allocation5], %s4537_s13 }
0x1340   : > { %v2362_v25 = vpop.xlane.xlu1 %2361 }
0x1341   : > { %3459 = vrcp.f32 %v2362_v25 }
0x1344   : > { %v2367_v26 = vpop.permute.xlu1 %2366 }
0x1345   : > { %3282 = vmatpush3.bf16.msra.mxu0 %v2367_v26 }
0x1346   : > { %3293 = vmatprep.subr.bf16.mxu0 %v3653_v4 }
0x134e   : > { %v3460_v44 = vpop.eup %3459 }
0x134f   : > { %v2364_v30 = vmul.f32 %v3460_v44, %v3458_v11  ;;  %v2558_v11 = vpack.c.bf16 %v2551_v10, %v2550_v8 }
0x1351   : > { %v2365_v27 = vpack.c.bf16 %v2364_v30, %v2364_v30 }
0x1353   : > { %3284 = vmatmul.mubr.msk.bf16.vlgmr.msra.gmra.mxu0 %vm1880_vm5, %v2365_v27 }
0x1354   : > { %3297 = vmatprep.mubr.msk.bf16.mxu0 %vm3654_vm1, %v3653_v4  ;;  %3294 = vmatpush3.bf16.msra.mxu0 %v2496_v52 }
0x1355   : > { %3295 = vmatprep.subr.bf16.mxu0 %v3653_v4 }
0x1413   : > { %v2406_v28 = vpop.f32.mrf.mxu0 }
0x1414   : > { %v2412_v29 = vpack.c.bf16 %v2406_v28, %v2406_v28 }
0x1415   : > { %v3285_v31 = vpop.f32.mrf.mxu0 }
0x1416   : > { %3290 = vmatmul.mubr.msk.bf16.vlgmr.msra.gmra.mxu1 %vm986_vm3, %v2412_v29 }
0x1417   : > { %v2409_v32 = vpop.f32.mrf.mxu0  ;;  %3309 = vmatprep.mubr.msk.bf16.mxu1 %vm3654_vm1, %v3653_v4  ;;  %3302 = vmatpush3.bf16.msra.mxu1 %v2560_v57 }
0x1418   : > { %3303 = vmatprep.subr.bf16.mxu1 %v3653_v4 }
0x1419   : > { %v3286_v34 = vpop.f32.mrf.mxu0 }
0x141b   : > { %3304 = vmatpush3.bf16.msra.mxu1 %v2559_v58 }
0x141c   : > { %3305 = vmatprep.subr.bf16.mxu1 %v3653_v4 }
0x141f   : > { %3306 = vmatpush3.bf16.msra.mxu1 %v2558_v11 }
0x1420   : > { %3307 = vmatprep.subr.bf16.mxu1 %v3653_v4  ;;  %v3012_v4 = vld [vmem:[%s803_s7] ss:$0 sm:$0xff]  ;;  %s4530_s7 = sld [smem:[#allocation17_spill]] }
0x1423   : > { %3308 = vmatpush3.bf16.msra.mxu1 %v2557_v16 }
0x1426   : > { %s2679_s29 = sadd.s32 %s4530_s7, %s3017_s11 }
0x1427   : > { %s3018_s15 = sshll.u32 %s2679_s29, 7 }
0x1428   : > { %s2681_s30 = scalar_lea.hbm %s4535_s27, %s3018_s15 }
0x14d6   : > { %v2454_v36 = vpop.f32.mrf.mxu1 }
0x14d7   : > { %v2460_v37 = vadd.f32 %v2454_v36, %v2302_v21 }
0x14d8   : > { %v3291_v38 = vpop.f32.mrf.mxu1 }
0x14d9   : > { %v2465_v39 = vadd.f32 %v2464_v35, %v2460_v37 }
0x14da   : > { %v2457_v42 = vpop.f32.mrf.mxu1 }
0x14db   : > { %v2466_v43 = vadd.f32 %v2465_v39, %v4185_v47  ;;  %v2491_v47 = vld [vmem:[%s3957_s28 + $0x8] sm:$0xff]  ;;  %v2629_v42 = vrot.slane %v4172_v40, %v4060_v6  ;;  %s3527_s28 = sshll.u32 %s3658_s16, 4  ;;  %s3528_s28 = int_to_ptr.vmem [resolvable:$false] %s3527_s28 }
0x14dc   : > { %v3292_v45 = vpop.f32.mrf.mxu1  ;;  %v2495_v63 = vpack.c.bf16 %v2491_v47, %v2490_v53  ;;  %v3014_v47 = vld [vmem:[%s4533_s12] ss:$0 sm:$0xff]  ;;  %s3529_s10 = scalar_lea.vmem %s3528_s28, 256  ;;  %p3530_p10 = scmp.lt.s32.totalorder %s2684_s6, %s3528_s28 }
0x14dd   : > { %v2467_v46 = vsel %vm829_vm2, %v2466_v43, 0.0  ;;  %p3531_p3 = scmp.lt.s32.totalorder %s3529_s10, %s3523_s4 }
0x14de   : > { %2468 = vadd.xlane.f32.xlu1 %v2467_v46  ;;  %3296 = vmatpush3.bf16.msra.mxu0 %v2495_v63  ;;  %v2634_v46 = vrot.slane %v4179_v41, %v4060_v6 }
0x14df   : > { %p3532_p11 = por %p3531_p3, %p3530_p10 }
0x14e1   : > { %p3533_p5 = pnand %p3532_p11, %p3526_p9 }
0x1567   : > { %v2469_v48 = vpop.xlane.xlu1 %2468 }
0x1568   : > { %v2470_v19 = vmul.f32 0.03125, %v2469_v48 }
0x156a   : > { %v2471_v0 = vsub.f32 %v2466_v43, %v2470_v19 }
0x156c   : > { %v2472_v50 = vmul.f32 %v2471_v0, %v2471_v0 }
0x156e   : > { %v2473_v49 = vsel %vm829_vm2, %v2472_v50, 0.0 }
0x156f   : > { %2474 = vadd.xlane.f32.xlu0 %v2473_v49 }
0x15f8   : > { %v2475_v59 = vpop.xlane.xlu0 %2474 }
0x15f9   : > { %v2476_v60 = vmul.f32 0.03125, %v2475_v59 }
0x15fb   : > { %v2477_v61 = vadd.f32 1e-05, %v2476_v60 }
0x15fd   : > { %3461 = vrsqrt.f32 %v2477_v61 }
0x160a   : > { %v3462_v1 = vpop.eup %3461 }
0x160b   : > { %v2479_v2 = vmul.f32 %v3462_v1, %v2471_v0 }
0x160d   : > { %v2484_v3 = vmul.f32 %v2483_v62, %v2479_v2 }
0x160f   : > { %v2489_v5 = vadd.f32 %v2488_v22, %v2484_v3 }
0x1611   : > { %v2494_v7 = vpack.c.bf16 %v2489_v5, %v2489_v5 }
0x1613   : > { %3298 = vmatmul.mubr.msk.bf16.vlgmr.msra.gmra.mxu0 %vm829_vm2, %v2494_v7 }
0x16d3   : > { %v2541_v21 = vpop.f32.mrf.mxu0 }
0x16d4   : > { %v2542_v17 = vadd.f32 %v3010_v20, %v2541_v21 }
0x16d5   : > { %v3299_v18 = vpop.f32.mrf.mxu0 }
0x16d6   : > { %v2547_v23 = vmax.f32 %v2542_v17, 0.0 }
0x16d7   : > { %v2544_v24 = vpop.f32.mrf.mxu0 }
0x16d8   : > { %v2556_v12 = vpack.c.bf16 %v2547_v23, %v2547_v23 }
0x16d9   : > { %v3300_v33 = vpop.f32.mrf.mxu0 }
0x16da   : > { %3310 = vmatmul.mubr.msk.bf16.vlgmr.msra.gmra.mxu1 %vm2568_vm6, %v2556_v12 }
0x179a   : > { %v2606_v25 = vpop.f32.mrf.mxu1 }
0x179b   : > { %v2607_v26 = vadd.f32 %v3012_v4, %v2606_v25 }
0x179c   : > { %v3311_v44 = vpop.f32.mrf.mxu1 }
0x179d   : > { %v2612_v30 = vadd.f32 %v2607_v26, %v2489_v5 }
0x179e   : > { %v2609_v27 = vpop.f32.mrf.mxu1 }
0x179f   : > { %v2613_v28 = vsel %vm829_vm2, %v2612_v30, 0.0 }
0x17a0   : > { %2614 = vadd.xlane.f32.xlu0 %v2613_v28  ;;  %v3312_v29 = vpop.f32.mrf.mxu1 }
0x1829   : > { %v2615_v31 = vpop.xlane.xlu0 %2614 }
0x182a   : > { %v2616_v32 = vmul.f32 0.03125, %v2615_v31 }
0x182c   : > { %v2617_v34 = vsub.f32 %v2612_v30, %v2616_v32 }
0x182e   : > { %v2618_v35 = vmul.f32 %v2617_v34, %v2617_v34 }
0x1830   : > { %v2619_v36 = vsel %vm829_vm2, %v2618_v35, 0.0 }
0x1831   : > { %2620 = vadd.xlane.f32.xlu0 %v2619_v36 }
0x18ba   : > { %v2621_v37 = vpop.xlane.xlu0 %2620 }
0x18bb   : > { %v2622_v38 = vmul.f32 0.03125, %v2621_v37 }
0x18bd   : > { %v2623_v39 = vadd.f32 1e-05, %v2622_v38 }
0x18bf   : > { %3463 = vrsqrt.f32 %v2623_v39 }
0x18cc   : > { %v3464_v43 = vpop.eup %3463 }
0x18cd   : > { %v2625_v45 = vmul.f32 %v3464_v43, %v2617_v34 }
0x18cf   : > { %v2630_v48 = vmul.f32 %v2629_v42, %v2625_v45 }
0x18d1   : > { %v2635_v19 = vadd.f32 %v2634_v46, %v2630_v48 }
0x18d3   : > { %v2639_v0 = vsel %vm829_vm2, %v2635_v19, 0.0  ;;  %2636 = vst.msk [vmem:[#allocation2] sm:$0xff] %vm829_vm2, %v2635_v19 }
0x18d4   : > { %2640 = vadd.xlane.f32.xlu0 %v2639_v0 }
0x195d   : > { %v2641_v50 = vpop.xlane.xlu0 %2640 }
0x195e   : > { %v2642_v49 = vmul.f32 0.03125, %v2641_v50 }
0x1960   : > { %v2643_v51 = vsub.f32 %v2635_v19, %v2642_v49 }
0x1962   : > { %v2644_v9 = vmul.f32 %v2643_v51, %v2643_v51 }
0x1964   : > { %v2645_v40 = vsel %vm829_vm2, %v2644_v9, 0.0 }
0x1965   : > { %2646 = vadd.xlane.f32.xlu0 %v2645_v40 }
0x19ee   : > { %v2647_v52 = vpop.xlane.xlu0 %2646 }
0x19ef   : > { %v2648_v6 = vmul.f32 0.03125, %v2647_v52 }
0x19f1   : > { %v2649_v41 = vadd.f32 1e-05, %v2648_v6 }
0x19f3   : > { %3465 = vrsqrt.f32 %v2649_v41 }
0x1a00   : > { %v3466_v53 = vpop.eup %3465 }
0x1a01   : > { %v2651_v63 = vmul.f32 %v3466_v53, %v2643_v51 }
0x1a03   : > { %v2658_v56 = vmul.f32 %v3014_v47, %v2651_v63 }
0x1a05   : > { %v2665_v14 = vadd.f32 %v3015_v54, %v2658_v56 }
0x1a07   : > { %2666 = vst.msk [vmem:[%s753_s2] sm:$0xff] %vm829_vm2, %v2665_v14 }
0x1a08   : > { %3536 = shalt.err (!%p3533_p5)
}
0x1a09   : > { %s3537_s1 = scalar_lea.hbm %s2681_s30, 128  ;;  %s3541_s17 = scalar_lea.hbm %s4536_s3, 512 }
0x1a0a   : > { %p3538_p12 = scmp.ne.s32.totalorder %s2681_s30, %s3537_s1  ;;  %p3542_p6 = scmp.lt.s32.totalorder %s2681_s30, %s4536_s3 }
0x1a0b   : > { %p3543_p8 = scmp.lt.s32.totalorder %s3541_s17, %s3537_s1 }
0x1a0c   : > { %p3539_p0 = pnand %p3538_p12, %p3834_p13 }
0x1a0d   : > { %p3544_p1 = por %p3543_p8, %p3542_p6 }
0x1a0e   : > { %p3540_p4 = pneg %p3539_p0 }
0x1a10   : > { %p3545_p7 = pnand %p3544_p1, %p3540_p4 }
0x1a12   : > { %3548 = shalt.err (!%p3545_p7)
}
0x1a13   : > { %3317 = dma.vmem_to_hbm [thread:$0]  (%p3834_p13), %s2684_s6, 128, %s2681_s30, %s2668_s20  }
0x1a14 PF: > { %s4538_s7 = sld [smem:[#allocation20_spill]] }
0x1a15   : > { %s4539_s8 = sld [smem:[#allocation12_spill]] }
0x1a1a   : > { %p3331_p9 = scmp.ge.s32.totalorder %s4538_s7, 2 }
0x1a1b   : > { %s2695_s29 = sand.u32 1, %s4539_s8  }
0x1a1c   : > { %p3327_p10 = pnand %p3331_p9, %p3839_p2  ;;  %s2696_s0 = scalar_lea.sflag [#allocation5], %s2695_s29 }
0x1a1e   : > { %p3328_p3 = pneg %p3327_p10 }
0x1a20   : > { %3602 = dma.done.wait (%p3328_p3), %s2696_s0, 128  }
0x1a21   : > { %3604 = vsyncadd (%p3328_p3), %s2696_s0, 4294967168  ;;  %s35_s0 = sadd.s32 1, %s4538_s7   ;;  %s4541_s21 = sld [smem:[#allocation13_spill]] }
0x1a22   : > { %p32_p11 = scmp.ge.s32.totalorder %s35_s0, 6   ;;  %s4542_s22 = sld [smem:[#allocation14_spill]] }
0x1a23   : > { %s4543_s23 = sld [smem:[#allocation24_spill]] }
0x1a24   : > { %s4544_s24 = sld [smem:[#allocation15_spill]] }
0x1a25   : > { %s4545_s25 = sld [smem:[#allocation16_spill]] }
0x1a26   : > { %s4546_s26 = sld [smem:[#allocation23_spill]]  ;;  %34 = sbr.rel (!%p32_p11) target bundleno = 28 (0x1c), region = 188 }
0x1a27   : > { %s4547_s27 = sld [smem:[#allocation18_spill]] }
0x1a28   : > { %s4548_s28 = sld [smem:[#allocation19_spill]] }
0x1a29   : > { %s4549_s29 = sld [smem:[#allocation21_spill]] }
0x1a2a   : > { %s4550_s30 = sld [smem:[#allocation22_spill]] }
0x1a2b   :  { %2701 = vsyncpa [#allocation4], 1 }
0x1a2c   :  { %2703 = vsyncpa [#allocation4 + $0x1], 1 }
0x1a2d   :  { %2704 = vsyncpa [#allocation7], 1 }
0x1a2e   :  { %2706 = vsyncpa [#allocation7 + $0x1], 1 }
0x1a2f   :  { %2707 = vsyncpa [#allocation5], 1 }
0x1a30   :  { %2709 = vsyncpa [#allocation5 + $0x1], 1 }

</bundles_post_ra>
